<compile_context>
chip_gen: v5e
topology: v5e:2x2
jax: 0.10.0
libtpu: 0.0.40
codegen_flags: <defaults>
</compile_context>

<pallas_src>
import jax
import jax.numpy as jnp
from jax.experimental import pallas as pl
from jax.experimental.pallas import tpu as pltpu

HIDDEN = 50   # real hidden size (PyTorch module)
H_PAD = 128   # hidden padded to a full 128-lane vreg row
B_PAD = 8     # batch padded to a full 8-sublane tile


# ---------------------------------------------------------------------------
# Pallas kernel: serial LSTM recurrence over one time chunk.
# ---------------------------------------------------------------------------
def lstm_recurrence_kernel(x_ref, wih_ref, b_ref, whh_ref, hs_ref, h_scr, c_scr):
    # x_ref:   (Tc, Bp, 1)   raw inputs for this time chunk (input_size == 1)
    # wih_ref: (1, 4*Hp)     input->hidden weights (gate order i,f,g,o), zero-padded
    # b_ref:   (1, 4*Hp)     b_ih + b_hh, zero-padded
    # whh_ref: (Hp, 4*Hp)    hidden->hidden, pre-transposed so gates = h @ W
    # hs_ref:  (Tc, Bp, Hp)  hidden states for this chunk (lane-dense output)
    # h_scr/c_scr: (Bp, Hp)  recurrent state, persistent across grid steps
    Tc, Bp, _ = x_ref.shape
    Hp, G = whh_ref.shape

    @pl.when(pl.program_id(0) == 0)
    def _():
        h_scr[...] = jnp.zeros_like(h_scr)
        c_scr[...] = jnp.zeros_like(c_scr)

    # Hoist weight load and the (1,G)->(Bp,G) broadcasts out of the time loop.
    whh = whh_ref[...]
    wih_b = jnp.broadcast_to(wih_ref[...], (Bp, G))
    b_b = jnp.broadcast_to(b_ref[...], (Bp, G))

    def sigmoid(z):
        # sigmoid(z) == 0.5*(tanh(z/2)+1): tanh goes to the EUP slot, no VPU divide.
        return 0.5 * (jnp.tanh(0.5 * z) + 1.0)

    def step(t, carry):
        h, c = carry                               # (Bp, Hp) each, kept in vregs
        x_t = x_ref[t]                             # (Bp, 1)
        # Single fused (Bp,Hp) @ (Hp,4*Hp) matmul for all four gates; in-kernel
        # input projection (broadcast-mul + add) rides free VPU slots.
        gates = (jnp.dot(h, whh, preferred_element_type=jnp.float32)
                 + x_t * wih_b + b_b)
        i_g = sigmoid(gates[:, 0 * Hp:1 * Hp])
        f_g = sigmoid(gates[:, 1 * Hp:2 * Hp])
        g_g = jnp.tanh(gates[:, 2 * Hp:3 * Hp])
        o_g = sigmoid(gates[:, 3 * Hp:4 * Hp])
        c_new = f_g * c + i_g * g_g
        h_new = o_g * jnp.tanh(c_new)
        hs_ref[t] = h_new                          # full (8,128) lane-dense store
        return (h_new, c_new)

    # h/c live in registers across the chunk; capped unroll for LLO visibility
    # without code-size blowup on long chunks.
    h_f, c_f = jax.lax.fori_loop(0, Tc, step, (h_scr[...], c_scr[...]), unroll=8)
    h_scr[...] = h_f
    c_scr[...] = c_f


# ---------------------------------------------------------------------------
# Parameter packing / padding
# ---------------------------------------------------------------------------
def pack_params(w_ih, w_hh, b_ih, b_hh, hidden=HIDDEN, h_pad=H_PAD):
    """Repack PyTorch-shaped LSTM params into fused, zero-padded tensors.

    Returns:
      wih_p: (1, 4*Hp)  input->hidden row (input_size == 1), zero in padding
      b_p:   (1, 4*Hp)  b_ih + b_hh, zero in padding
      whh_p: (Hp, 4*Hp) hidden->hidden, transposed so gates = h @ whh_p
    Zero padding keeps padded gate pre-activations at 0 -> padded h/c lanes stay 0.
    """
    H, Hp = hidden, h_pad
    wih4 = w_ih[:, 0].reshape(4, H)                 # (gate, out_j)
    whh4 = w_hh.reshape(4, H, H)                    # (gate, out_j, in_k)
    b4 = (b_ih + b_hh).reshape(4, H)

    wih_p = jnp.zeros((4, Hp), jnp.float32).at[:, :H].set(wih4).reshape(1, 4 * Hp)
    b_p = jnp.zeros((4, Hp), jnp.float32).at[:, :H].set(b4).reshape(1, 4 * Hp)
    whh_t = jnp.transpose(whh4, (2, 0, 1))          # (in_k, gate, out_j)
    whh_p = (jnp.zeros((Hp, 4, Hp), jnp.float32)
             .at[:H, :, :H].set(whh_t)
             .reshape(Hp, 4 * Hp))
    return wih_p, b_p, whh_p


# ---------------------------------------------------------------------------
# Forward: wrapper (padding + final Linear) around the time-chunked kernel
# ---------------------------------------------------------------------------
def lstm_linear_forward(x, w_ih, w_hh, b_ih, b_hh, w_lin, b_lin,
                        hidden=HIDDEN, h_pad=H_PAD, time_chunk=256):
    """x: (B, T, 1) float32 -> (B, T, 1) float32, matching the PyTorch module."""
    B, T, _ = x.shape
    Bp = max(B_PAD, ((B + 7) // 8) * 8)
    Tc = min(T, time_chunk)                         # timesteps per grid step
    nT = pl.cdiv(T, Tc)
    Tp = nT * Tc

    wih_p, b_p, whh_p = pack_params(w_ih, w_hh, b_ih, b_hh, hidden, h_pad)

    # Raw inputs only (no 4*Hp-wide HBM intermediate): (Tp, Bp, 1).
    x_tb = jnp.transpose(x, (1, 0, 2))                               # (T, B, 1)
    x_tb = jnp.pad(x_tb, ((0, Tp - T), (0, Bp - B), (0, 0)))         # (Tp, Bp, 1)

    hs = pl.pallas_call(
        lstm_recurrence_kernel,
        out_shape=jax.ShapeDtypeStruct((Tp, Bp, h_pad), jnp.float32),
        grid=(nT,),
        in_specs=[
            pl.BlockSpec((Tc, Bp, 1), lambda t: (t, 0, 0)),          # x chunk
            pl.BlockSpec((1, 4 * h_pad), lambda t: (0, 0)),          # W_ih (resident)
            pl.BlockSpec((1, 4 * h_pad), lambda t: (0, 0)),          # bias (resident)
            pl.BlockSpec((h_pad, 4 * h_pad), lambda t: (0, 0)),      # W_hh (resident)
        ],
        out_specs=pl.BlockSpec((Tc, Bp, h_pad), lambda t: (t, 0, 0)),
        scratch_shapes=[pltpu.VMEM((Bp, h_pad), jnp.float32),        # h state
                        pltpu.VMEM((Bp, h_pad), jnp.float32)],       # c state
        compiler_params=pltpu.CompilerParams(
            dimension_semantics=("arbitrary",)),                     # serial in time
    )(x_tb, wih_p, b_p, whh_p)

    # Final Linear(50 -> 1): contract the padded lane dim directly with a
    # zero-padded weight vector (padded lanes contribute 0) -> no relayout of hs.
    w_lin_p = jnp.zeros((h_pad,), jnp.float32).at[:hidden].set(w_lin[0])
    y = jnp.einsum('tbh,h->tb', hs, w_lin_p)                          # (Tp, Bp)
    return jnp.transpose(y[:T, :B], (1, 0))[:, :, None] + b_lin       # (B, T, 1)


# ---------------------------------------------------------------------------
# Synthetic init + pure-JAX reference (mirrors torch.nn.LSTM + Linear)
# ---------------------------------------------------------------------------
def init_params(key, hidden=HIDDEN):
    k = 1.0 / jnp.sqrt(jnp.float32(hidden))
    ks = jax.random.split(key, 6)
    w_ih = jax.random.uniform(ks[0], (4 * hidden, 1), jnp.float32, -k, k)
    w_hh = jax.random.uniform(ks[1], (4 * hidden, hidden), jnp.float32, -k, k)
    b_ih = jax.random.uniform(ks[2], (4 * hidden,), jnp.float32, -k, k)
    b_hh = jax.random.uniform(ks[3], (4 * hidden,), jnp.float32, -k, k)
    w_lin = jax.random.uniform(ks[4], (1, hidden), jnp.float32, -k, k)
    b_lin = jax.random.uniform(ks[5], (1,), jnp.float32, -k, k)
    return w_ih, w_hh, b_ih, b_hh, w_lin, b_lin


def reference_forward(x, w_ih, w_hh, b_ih, b_hh, w_lin, b_lin, hidden=HIDDEN):
    B = x.shape[0]

    def cell(carry, x_t):
        h, c = carry
        gates = x_t @ w_ih.T + h @ w_hh.T + b_ih + b_hh
        i, f, g, o = jnp.split(gates, 4, axis=-1)
        i = 1.0 / (1.0 + jnp.exp(-i))
        f = 1.0 / (1.0 + jnp.exp(-f))
        o = 1.0 / (1.0 + jnp.exp(-o))
        g = jnp.tanh(g)
        c = f * c + i * g
        h = o * jnp.tanh(c)
        return (h, c), h

    h0 = jnp.zeros((B, hidden), jnp.float32)
    c0 = jnp.zeros((B, hidden), jnp.float32)
    _, hs = jax.lax.scan(cell, (h0, c0), jnp.transpose(x, (1, 0, 2)))
    hs = jnp.transpose(hs, (1, 0, 2))                                # (B, T, H)
    return hs @ w_lin.T + b_lin


if __name__ == "__main__":
    key = jax.random.PRNGKey(0)
    k_x, k_p = jax.random.split(key)

    B, T = 2, 8
    x = jax.random.normal(k_x, (B, T, 1), dtype=jnp.float32)

    params = init_params(k_p)

    out = lstm_linear_forward(x, *params)
    out = jax.block_until_ready(out)

    ref = reference_forward(x, *params)
    assert out.shape == (B, T, 1)
    assert jnp.allclose(out, ref, atol=1e-4, rtol=1e-4)

    print("KERNEL_OK")
</pallas_src>

<mosaic_0001>
module attributes {stable_mosaic.version = 11 : i64} {
  func.func @lstm_recurrence_kernel(%arg0: i32, %arg1: memref<8x8x1xf32, #tpu.memory_space<vmem>>, %arg2: memref<1x512xf32, #tpu.memory_space<vmem>>, %arg3: memref<1x512xf32, #tpu.memory_space<vmem>>, %arg4: memref<128x512xf32, #tpu.memory_space<vmem>>, %arg5: memref<8x8x128xf32, #tpu.memory_space<vmem>>, %arg6: memref<8x128xf32, #tpu.memory_space<vmem>>, %arg7: memref<8x128xf32, #tpu.memory_space<vmem>>) attributes {dimension_semantics = [#tpu.dimension_semantics<arbitrary>], iteration_bounds = array<i64: 1>, scalar_prefetch = 0 : i64, scratch_operands = 2 : i64, tpu.core_type = #tpu.core_type<tc>, window_params = [{transform_indices = @transform_0, window_bounds = array<i64: 8, 8, 1>}, {pipeline_mode = #tpu.pipeline_mode<synchronous>, transform_indices = @transform_1, window_bounds = array<i64: 1, 512>}, {pipeline_mode = #tpu.pipeline_mode<synchronous>, transform_indices = @transform_2, window_bounds = array<i64: 1, 512>}, {pipeline_mode = #tpu.pipeline_mode<synchronous>, transform_indices = @transform_3, window_bounds = array<i64: 128, 512>}, {transform_indices = @transform_4, window_bounds = array<i64: 8, 8, 128>}]} {
    %c0_i32 = arith.constant 0 : i32
    %0 = arith.cmpi eq, %arg0, %c0_i32 : i32
    %1 = arith.extui %0 : i1 to i32
    %c0_i32_0 = arith.constant 0 : i32
    %2 = arith.cmpi ne, %1, %c0_i32_0 : i32
    scf.if %2 {
      %cst_126 = arith.constant 0.000000e+00 : f32
      %358 = vector.broadcast %cst_126 : f32 to vector<8x128xf32>
      %c0_127 = arith.constant 0 : index
      %c0_128 = arith.constant 0 : index
      %359 = vector.load %arg6[%c0_127, %c0_128] : memref<8x128xf32, #tpu.memory_space<vmem>>, vector<8x128xf32>
      tpu.vector_store %arg6[%c0_127, %c0_128], %358 {strides = array<i32>} : memref<8x128xf32, #tpu.memory_space<vmem>>, vector<8x128xf32>,
      %cst_129 = arith.constant 0.000000e+00 : f32
      %360 = vector.broadcast %cst_129 : f32 to vector<8x128xf32>
      %c0_130 = arith.constant 0 : index
      %c0_131 = arith.constant 0 : index
      %361 = vector.load %arg7[%c0_130, %c0_131] : memref<8x128xf32, #tpu.memory_space<vmem>>, vector<8x128xf32>
      tpu.vector_store %arg7[%c0_130, %c0_131], %360 {strides = array<i32>} : memref<8x128xf32, #tpu.memory_space<vmem>>, vector<8x128xf32>,
    } else {
    }
    %c0 = arith.constant 0 : index
    %c0_1 = arith.constant 0 : index
    %3 = vector.load %arg4[%c0, %c0_1] : memref<128x512xf32, #tpu.memory_space<vmem>>, vector<128x512xf32>
    %c0_2 = arith.constant 0 : index
    %c0_3 = arith.constant 0 : index
    %4 = vector.load %arg2[%c0_2, %c0_3] : memref<1x512xf32, #tpu.memory_space<vmem>>, vector<1x512xf32>
    %5 = vector.shape_cast %4 : vector<1x512xf32> to vector<1x512xf32>
    %6 = vector.broadcast %5 : vector<1x512xf32> to vector<8x512xf32>
    %c0_4 = arith.constant 0 : index
    %c0_5 = arith.constant 0 : index
    %7 = vector.load %arg3[%c0_4, %c0_5] : memref<1x512xf32, #tpu.memory_space<vmem>>, vector<1x512xf32>
    %8 = vector.shape_cast %7 : vector<1x512xf32> to vector<1x512xf32>
    %9 = vector.broadcast %8 : vector<1x512xf32> to vector<8x512xf32>
    %c0_6 = arith.constant 0 : index
    %c0_7 = arith.constant 0 : index
    %10 = vector.load %arg6[%c0_6, %c0_7] : memref<8x128xf32, #tpu.memory_space<vmem>>, vector<8x128xf32>
    %c0_8 = arith.constant 0 : index
    %c0_9 = arith.constant 0 : index
    %11 = vector.load %arg7[%c0_8, %c0_9] : memref<8x128xf32, #tpu.memory_space<vmem>>, vector<8x128xf32>
    %c0_i32_10 = arith.constant 0 : i32
    %12 = arith.index_cast %c0_i32_10 : i32 to index
    %c0_11 = arith.constant 0 : index
    %c0_12 = arith.constant 0 : index
    %13 = vector.load %arg1[%12, %c0_11, %c0_12] : memref<8x8x1xf32, #tpu.memory_space<vmem>>, vector<1x8x1xf32>
    %14 = vector.shape_cast %13 : vector<1x8x1xf32> to vector<8x1xf32>
    %cst = arith.constant dense<0.000000e+00> : vector<8x512xf32>
    %15 = tpu.matmul %10, %3, %cst {dimension_numbers = #tpu.dot_dimension_numbers<[1], [0], [0], [1], [0, 0, 1, 1], [], []>} : vector<8x128xf32>, vector<128x512xf32>, vector<8x512xf32> -> vector<8x512xf32>
    %16 = vector.broadcast %14 : vector<8x1xf32> to vector<8x512xf32>
    %17 = arith.mulf %16, %6 : vector<8x512xf32>
    %18 = arith.addf %15, %17 : vector<8x512xf32>
    %19 = arith.addf %18, %9 : vector<8x512xf32>
    %20 = vector.extract_strided_slice %19 {offsets = [0, 0], sizes = [8, 128], strides = [1, 1]} : vector<8x512xf32> to vector<8x128xf32>
    %cst_13 = arith.constant 5.000000e-01 : f32
    %21 = vector.broadcast %cst_13 : f32 to vector<8x128xf32>
    %22 = arith.mulf %21, %20 : vector<8x128xf32>
    %23 = math.tanh %22 : vector<8x128xf32>
    %cst_14 = arith.constant 1.000000e+00 : f32
    %24 = vector.broadcast %cst_14 : f32 to vector<8x128xf32>
    %25 = arith.addf %23, %24 : vector<8x128xf32>
    %cst_15 = arith.constant 5.000000e-01 : f32
    %26 = vector.broadcast %cst_15 : f32 to vector<8x128xf32>
    %27 = arith.mulf %26, %25 : vector<8x128xf32>
    %28 = vector.extract_strided_slice %19 {offsets = [0, 128], sizes = [8, 128], strides = [1, 1]} : vector<8x512xf32> to vector<8x128xf32>
    %cst_16 = arith.constant 5.000000e-01 : f32
    %29 = vector.broadcast %cst_16 : f32 to vector<8x128xf32>
    %30 = arith.mulf %29, %28 : vector<8x128xf32>
    %31 = math.tanh %30 : vector<8x128xf32>
    %cst_17 = arith.constant 1.000000e+00 : f32
    %32 = vector.broadcast %cst_17 : f32 to vector<8x128xf32>
    %33 = arith.addf %31, %32 : vector<8x128xf32>
    %cst_18 = arith.constant 5.000000e-01 : f32
    %34 = vector.broadcast %cst_18 : f32 to vector<8x128xf32>
    %35 = arith.mulf %34, %33 : vector<8x128xf32>
    %36 = vector.extract_strided_slice %19 {offsets = [0, 256], sizes = [8, 128], strides = [1, 1]} : vector<8x512xf32> to vector<8x128xf32>
    %37 = math.tanh %36 : vector<8x128xf32>
    %38 = vector.extract_strided_slice %19 {offsets = [0, 384], sizes = [8, 128], strides = [1, 1]} : vector<8x512xf32> to vector<8x128xf32>
    %cst_19 = arith.constant 5.000000e-01 : f32
    %39 = vector.broadcast %cst_19 : f32 to vector<8x128xf32>
    %40 = arith.mulf %39, %38 : vector<8x128xf32>
    %41 = math.tanh %40 : vector<8x128xf32>
    %cst_20 = arith.constant 1.000000e+00 : f32
    %42 = vector.broadcast %cst_20 : f32 to vector<8x128xf32>
    %43 = arith.addf %41, %42 : vector<8x128xf32>
    %cst_21 = arith.constant 5.000000e-01 : f32
    %44 = vector.broadcast %cst_21 : f32 to vector<8x128xf32>
    %45 = arith.mulf %44, %43 : vector<8x128xf32>
    %46 = arith.mulf %35, %11 : vector<8x128xf32>
    %47 = arith.mulf %27, %37 : vector<8x128xf32>
    %48 = arith.addf %46, %47 : vector<8x128xf32>
    %49 = math.tanh %48 : vector<8x128xf32>
    %50 = arith.mulf %45, %49 : vector<8x128xf32>
    %51 = arith.index_cast %c0_i32_10 : i32 to index
    %c0_22 = arith.constant 0 : index
    %c0_23 = arith.constant 0 : index
    %52 = vector.load %arg5[%51, %c0_22, %c0_23] : memref<8x8x128xf32, #tpu.memory_space<vmem>>, vector<1x8x128xf32>
    %53 = vector.shape_cast %52 : vector<1x8x128xf32> to vector<8x128xf32>
    %54 = vector.shape_cast %50 : vector<8x128xf32> to vector<1x8x128xf32>
    tpu.vector_store %arg5[%51, %c0_22, %c0_23], %54 {strides = array<i32>} : memref<8x8x128xf32, #tpu.memory_space<vmem>>, vector<1x8x128xf32>,
    %c1_i32 = arith.constant 1 : i32
    %55 = arith.index_cast %c1_i32 : i32 to index
    %c0_24 = arith.constant 0 : index
    %c0_25 = arith.constant 0 : index
    %56 = vector.load %arg1[%55, %c0_24, %c0_25] : memref<8x8x1xf32, #tpu.memory_space<vmem>>, vector<1x8x1xf32>
    %57 = vector.shape_cast %56 : vector<1x8x1xf32> to vector<8x1xf32>
    %cst_26 = arith.constant dense<0.000000e+00> : vector<8x512xf32>
    %58 = tpu.matmul %50, %3, %cst_26 {dimension_numbers = #tpu.dot_dimension_numbers<[1], [0], [0], [1], [0, 0, 1, 1], [], []>} : vector<8x128xf32>, vector<128x512xf32>, vector<8x512xf32> -> vector<8x512xf32>
    %59 = vector.broadcast %57 : vector<8x1xf32> to vector<8x512xf32>
    %60 = arith.mulf %59, %6 : vector<8x512xf32>
    %61 = arith.addf %58, %60 : vector<8x512xf32>
    %62 = arith.addf %61, %9 : vector<8x512xf32>
    %63 = vector.extract_strided_slice %62 {offsets = [0, 0], sizes = [8, 128], strides = [1, 1]} : vector<8x512xf32> to vector<8x128xf32>
    %cst_27 = arith.constant 5.000000e-01 : f32
    %64 = vector.broadcast %cst_27 : f32 to vector<8x128xf32>
    %65 = arith.mulf %64, %63 : vector<8x128xf32>
    %66 = math.tanh %65 : vector<8x128xf32>
    %cst_28 = arith.constant 1.000000e+00 : f32
    %67 = vector.broadcast %cst_28 : f32 to vector<8x128xf32>
    %68 = arith.addf %66, %67 : vector<8x128xf32>
    %cst_29 = arith.constant 5.000000e-01 : f32
    %69 = vector.broadcast %cst_29 : f32 to vector<8x128xf32>
    %70 = arith.mulf %69, %68 : vector<8x128xf32>
    %71 = vector.extract_strided_slice %62 {offsets = [0, 128], sizes = [8, 128], strides = [1, 1]} : vector<8x512xf32> to vector<8x128xf32>
    %cst_30 = arith.constant 5.000000e-01 : f32
    %72 = vector.broadcast %cst_30 : f32 to vector<8x128xf32>
    %73 = arith.mulf %72, %71 : vector<8x128xf32>
    %74 = math.tanh %73 : vector<8x128xf32>
    %cst_31 = arith.constant 1.000000e+00 : f32
    %75 = vector.broadcast %cst_31 : f32 to vector<8x128xf32>
    %76 = arith.addf %74, %75 : vector<8x128xf32>
    %cst_32 = arith.constant 5.000000e-01 : f32
    %77 = vector.broadcast %cst_32 : f32 to vector<8x128xf32>
    %78 = arith.mulf %77, %76 : vector<8x128xf32>
    %79 = vector.extract_strided_slice %62 {offsets = [0, 256], sizes = [8, 128], strides = [1, 1]} : vector<8x512xf32> to vector<8x128xf32>
    %80 = math.tanh %79 : vector<8x128xf32>
    %81 = vector.extract_strided_slice %62 {offsets = [0, 384], sizes = [8, 128], strides = [1, 1]} : vector<8x512xf32> to vector<8x128xf32>
    %cst_33 = arith.constant 5.000000e-01 : f32
    %82 = vector.broadcast %cst_33 : f32 to vector<8x128xf32>
    %83 = arith.mulf %82, %81 : vector<8x128xf32>
    %84 = math.tanh %83 : vector<8x128xf32>
    %cst_34 = arith.constant 1.000000e+00 : f32
    %85 = vector.broadcast %cst_34 : f32 to vector<8x128xf32>
    %86 = arith.addf %84, %85 : vector<8x128xf32>
    %cst_35 = arith.constant 5.000000e-01 : f32
    %87 = vector.broadcast %cst_35 : f32 to vector<8x128xf32>
    %88 = arith.mulf %87, %86 : vector<8x128xf32>
    %89 = arith.mulf %78, %48 : vector<8x128xf32>
    %90 = arith.mulf %70, %80 : vector<8x128xf32>
    %91 = arith.addf %89, %90 : vector<8x128xf32>
    %92 = math.tanh %91 : vector<8x128xf32>
    %93 = arith.mulf %88, %92 : vector<8x128xf32>
    %94 = arith.index_cast %c1_i32 : i32 to index
    %c0_36 = arith.constant 0 : index
    %c0_37 = arith.constant 0 : index
    %95 = vector.load %arg5[%94, %c0_36, %c0_37] : memref<8x8x128xf32, #tpu.memory_space<vmem>>, vector<1x8x128xf32>
    %96 = vector.shape_cast %95 : vector<1x8x128xf32> to vector<8x128xf32>
    %97 = vector.shape_cast %93 : vector<8x128xf32> to vector<1x8x128xf32>
    tpu.vector_store %arg5[%94, %c0_36, %c0_37], %97 {strides = array<i32>} : memref<8x8x128xf32, #tpu.memory_space<vmem>>, vector<1x8x128xf32>,
    %c2_i32 = arith.constant 2 : i32
    %98 = arith.index_cast %c2_i32 : i32 to index
    %c0_38 = arith.constant 0 : index
    %c0_39 = arith.constant 0 : index
    %99 = vector.load %arg1[%98, %c0_38, %c0_39] : memref<8x8x1xf32, #tpu.memory_space<vmem>>, vector<1x8x1xf32>
    %100 = vector.shape_cast %99 : vector<1x8x1xf32> to vector<8x1xf32>
    %cst_40 = arith.constant dense<0.000000e+00> : vector<8x512xf32>
    %101 = tpu.matmul %93, %3, %cst_40 {dimension_numbers = #tpu.dot_dimension_numbers<[1], [0], [0], [1], [0, 0, 1, 1], [], []>} : vector<8x128xf32>, vector<128x512xf32>, vector<8x512xf32> -> vector<8x512xf32>
    %102 = vector.broadcast %100 : vector<8x1xf32> to vector<8x512xf32>
    %103 = arith.mulf %102, %6 : vector<8x512xf32>
    %104 = arith.addf %101, %103 : vector<8x512xf32>
    %105 = arith.addf %104, %9 : vector<8x512xf32>
    %106 = vector.extract_strided_slice %105 {offsets = [0, 0], sizes = [8, 128], strides = [1, 1]} : vector<8x512xf32> to vector<8x128xf32>
    %cst_41 = arith.constant 5.000000e-01 : f32
    %107 = vector.broadcast %cst_41 : f32 to vector<8x128xf32>
    %108 = arith.mulf %107, %106 : vector<8x128xf32>
    %109 = math.tanh %108 : vector<8x128xf32>
    %cst_42 = arith.constant 1.000000e+00 : f32
    %110 = vector.broadcast %cst_42 : f32 to vector<8x128xf32>
    %111 = arith.addf %109, %110 : vector<8x128xf32>
    %cst_43 = arith.constant 5.000000e-01 : f32
    %112 = vector.broadcast %cst_43 : f32 to vector<8x128xf32>
    %113 = arith.mulf %112, %111 : vector<8x128xf32>
    %114 = vector.extract_strided_slice %105 {offsets = [0, 128], sizes = [8, 128], strides = [1, 1]} : vector<8x512xf32> to vector<8x128xf32>
    %cst_44 = arith.constant 5.000000e-01 : f32
    %115 = vector.broadcast %cst_44 : f32 to vector<8x128xf32>
    %116 = arith.mulf %115, %114 : vector<8x128xf32>
    %117 = math.tanh %116 : vector<8x128xf32>
    %cst_45 = arith.constant 1.000000e+00 : f32
    %118 = vector.broadcast %cst_45 : f32 to vector<8x128xf32>
    %119 = arith.addf %117, %118 : vector<8x128xf32>
    %cst_46 = arith.constant 5.000000e-01 : f32
    %120 = vector.broadcast %cst_46 : f32 to vector<8x128xf32>
    %121 = arith.mulf %120, %119 : vector<8x128xf32>
    %122 = vector.extract_strided_slice %105 {offsets = [0, 256], sizes = [8, 128], strides = [1, 1]} : vector<8x512xf32> to vector<8x128xf32>
    %123 = math.tanh %122 : vector<8x128xf32>
    %124 = vector.extract_strided_slice %105 {offsets = [0, 384], sizes = [8, 128], strides = [1, 1]} : vector<8x512xf32> to vector<8x128xf32>
    %cst_47 = arith.constant 5.000000e-01 : f32
    %125 = vector.broadcast %cst_47 : f32 to vector<8x128xf32>
    %126 = arith.mulf %125, %124 : vector<8x128xf32>
    %127 = math.tanh %126 : vector<8x128xf32>
    %cst_48 = arith.constant 1.000000e+00 : f32
    %128 = vector.broadcast %cst_48 : f32 to vector<8x128xf32>
    %129 = arith.addf %127, %128 : vector<8x128xf32>
    %cst_49 = arith.constant 5.000000e-01 : f32
    %130 = vector.broadcast %cst_49 : f32 to vector<8x128xf32>
    %131 = arith.mulf %130, %129 : vector<8x128xf32>
    %132 = arith.mulf %121, %91 : vector<8x128xf32>
    %133 = arith.mulf %113, %123 : vector<8x128xf32>
    %134 = arith.addf %132, %133 : vector<8x128xf32>
    %135 = math.tanh %134 : vector<8x128xf32>
    %136 = arith.mulf %131, %135 : vector<8x128xf32>
    %137 = arith.index_cast %c2_i32 : i32 to index
    %c0_50 = arith.constant 0 : index
    %c0_51 = arith.constant 0 : index
    %138 = vector.load %arg5[%137, %c0_50, %c0_51] : memref<8x8x128xf32, #tpu.memory_space<vmem>>, vector<1x8x128xf32>
    %139 = vector.shape_cast %138 : vector<1x8x128xf32> to vector<8x128xf32>
    %140 = vector.shape_cast %136 : vector<8x128xf32> to vector<1x8x128xf32>
    tpu.vector_store %arg5[%137, %c0_50, %c0_51], %140 {strides = array<i32>} : memref<8x8x128xf32, #tpu.memory_space<vmem>>, vector<1x8x128xf32>,
    %c3_i32 = arith.constant 3 : i32
    %141 = arith.index_cast %c3_i32 : i32 to index
    %c0_52 = arith.constant 0 : index
    %c0_53 = arith.constant 0 : index
    %142 = vector.load %arg1[%141, %c0_52, %c0_53] : memref<8x8x1xf32, #tpu.memory_space<vmem>>, vector<1x8x1xf32>
    %143 = vector.shape_cast %142 : vector<1x8x1xf32> to vector<8x1xf32>
    %cst_54 = arith.constant dense<0.000000e+00> : vector<8x512xf32>
    %144 = tpu.matmul %136, %3, %cst_54 {dimension_numbers = #tpu.dot_dimension_numbers<[1], [0], [0], [1], [0, 0, 1, 1], [], []>} : vector<8x128xf32>, vector<128x512xf32>, vector<8x512xf32> -> vector<8x512xf32>
    %145 = vector.broadcast %143 : vector<8x1xf32> to vector<8x512xf32>
    %146 = arith.mulf %145, %6 : vector<8x512xf32>
    %147 = arith.addf %144, %146 : vector<8x512xf32>
    %148 = arith.addf %147, %9 : vector<8x512xf32>
    %149 = vector.extract_strided_slice %148 {offsets = [0, 0], sizes = [8, 128], strides = [1, 1]} : vector<8x512xf32> to vector<8x128xf32>
    %cst_55 = arith.constant 5.000000e-01 : f32
    %150 = vector.broadcast %cst_55 : f32 to vector<8x128xf32>
    %151 = arith.mulf %150, %149 : vector<8x128xf32>
    %152 = math.tanh %151 : vector<8x128xf32>
    %cst_56 = arith.constant 1.000000e+00 : f32
    %153 = vector.broadcast %cst_56 : f32 to vector<8x128xf32>
    %154 = arith.addf %152, %153 : vector<8x128xf32>
    %cst_57 = arith.constant 5.000000e-01 : f32
    %155 = vector.broadcast %cst_57 : f32 to vector<8x128xf32>
    %156 = arith.mulf %155, %154 : vector<8x128xf32>
    %157 = vector.extract_strided_slice %148 {offsets = [0, 128], sizes = [8, 128], strides = [1, 1]} : vector<8x512xf32> to vector<8x128xf32>
    %cst_58 = arith.constant 5.000000e-01 : f32
    %158 = vector.broadcast %cst_58 : f32 to vector<8x128xf32>
    %159 = arith.mulf %158, %157 : vector<8x128xf32>
    %160 = math.tanh %159 : vector<8x128xf32>
    %cst_59 = arith.constant 1.000000e+00 : f32
    %161 = vector.broadcast %cst_59 : f32 to vector<8x128xf32>
    %162 = arith.addf %160, %161 : vector<8x128xf32>
    %cst_60 = arith.constant 5.000000e-01 : f32
    %163 = vector.broadcast %cst_60 : f32 to vector<8x128xf32>
    %164 = arith.mulf %163, %162 : vector<8x128xf32>
    %165 = vector.extract_strided_slice %148 {offsets = [0, 256], sizes = [8, 128], strides = [1, 1]} : vector<8x512xf32> to vector<8x128xf32>
    %166 = math.tanh %165 : vector<8x128xf32>
    %167 = vector.extract_strided_slice %148 {offsets = [0, 384], sizes = [8, 128], strides = [1, 1]} : vector<8x512xf32> to vector<8x128xf32>
    %cst_61 = arith.constant 5.000000e-01 : f32
    %168 = vector.broadcast %cst_61 : f32 to vector<8x128xf32>
    %169 = arith.mulf %168, %167 : vector<8x128xf32>
    %170 = math.tanh %169 : vector<8x128xf32>
    %cst_62 = arith.constant 1.000000e+00 : f32
    %171 = vector.broadcast %cst_62 : f32 to vector<8x128xf32>
    %172 = arith.addf %170, %171 : vector<8x128xf32>
    %cst_63 = arith.constant 5.000000e-01 : f32
    %173 = vector.broadcast %cst_63 : f32 to vector<8x128xf32>
    %174 = arith.mulf %173, %172 : vector<8x128xf32>
    %175 = arith.mulf %164, %134 : vector<8x128xf32>
    %176 = arith.mulf %156, %166 : vector<8x128xf32>
    %177 = arith.addf %175, %176 : vector<8x128xf32>
    %178 = math.tanh %177 : vector<8x128xf32>
    %179 = arith.mulf %174, %178 : vector<8x128xf32>
    %180 = arith.index_cast %c3_i32 : i32 to index
    %c0_64 = arith.constant 0 : index
    %c0_65 = arith.constant 0 : index
    %181 = vector.load %arg5[%180, %c0_64, %c0_65] : memref<8x8x128xf32, #tpu.memory_space<vmem>>, vector<1x8x128xf32>
    %182 = vector.shape_cast %181 : vector<1x8x128xf32> to vector<8x128xf32>
    %183 = vector.shape_cast %179 : vector<8x128xf32> to vector<1x8x128xf32>
    tpu.vector_store %arg5[%180, %c0_64, %c0_65], %183 {strides = array<i32>} : memref<8x8x128xf32, #tpu.memory_space<vmem>>, vector<1x8x128xf32>,
    %c4_i32 = arith.constant 4 : i32
    %184 = arith.index_cast %c4_i32 : i32 to index
    %c0_66 = arith.constant 0 : index
    %c0_67 = arith.constant 0 : index
    %185 = vector.load %arg1[%184, %c0_66, %c0_67] : memref<8x8x1xf32, #tpu.memory_space<vmem>>, vector<1x8x1xf32>
    %186 = vector.shape_cast %185 : vector<1x8x1xf32> to vector<8x1xf32>
    %cst_68 = arith.constant dense<0.000000e+00> : vector<8x512xf32>
    %187 = tpu.matmul %179, %3, %cst_68 {dimension_numbers = #tpu.dot_dimension_numbers<[1], [0], [0], [1], [0, 0, 1, 1], [], []>} : vector<8x128xf32>, vector<128x512xf32>, vector<8x512xf32> -> vector<8x512xf32>
    %188 = vector.broadcast %186 : vector<8x1xf32> to vector<8x512xf32>
    %189 = arith.mulf %188, %6 : vector<8x512xf32>
    %190 = arith.addf %187, %189 : vector<8x512xf32>
    %191 = arith.addf %190, %9 : vector<8x512xf32>
    %192 = vector.extract_strided_slice %191 {offsets = [0, 0], sizes = [8, 128], strides = [1, 1]} : vector<8x512xf32> to vector<8x128xf32>
    %cst_69 = arith.constant 5.000000e-01 : f32
    %193 = vector.broadcast %cst_69 : f32 to vector<8x128xf32>
    %194 = arith.mulf %193, %192 : vector<8x128xf32>
    %195 = math.tanh %194 : vector<8x128xf32>
    %cst_70 = arith.constant 1.000000e+00 : f32
    %196 = vector.broadcast %cst_70 : f32 to vector<8x128xf32>
    %197 = arith.addf %195, %196 : vector<8x128xf32>
    %cst_71 = arith.constant 5.000000e-01 : f32
    %198 = vector.broadcast %cst_71 : f32 to vector<8x128xf32>
    %199 = arith.mulf %198, %197 : vector<8x128xf32>
    %200 = vector.extract_strided_slice %191 {offsets = [0, 128], sizes = [8, 128], strides = [1, 1]} : vector<8x512xf32> to vector<8x128xf32>
    %cst_72 = arith.constant 5.000000e-01 : f32
    %201 = vector.broadcast %cst_72 : f32 to vector<8x128xf32>
    %202 = arith.mulf %201, %200 : vector<8x128xf32>
    %203 = math.tanh %202 : vector<8x128xf32>
    %cst_73 = arith.constant 1.000000e+00 : f32
    %204 = vector.broadcast %cst_73 : f32 to vector<8x128xf32>
    %205 = arith.addf %203, %204 : vector<8x128xf32>
    %cst_74 = arith.constant 5.000000e-01 : f32
    %206 = vector.broadcast %cst_74 : f32 to vector<8x128xf32>
    %207 = arith.mulf %206, %205 : vector<8x128xf32>
    %208 = vector.extract_strided_slice %191 {offsets = [0, 256], sizes = [8, 128], strides = [1, 1]} : vector<8x512xf32> to vector<8x128xf32>
    %209 = math.tanh %208 : vector<8x128xf32>
    %210 = vector.extract_strided_slice %191 {offsets = [0, 384], sizes = [8, 128], strides = [1, 1]} : vector<8x512xf32> to vector<8x128xf32>
    %cst_75 = arith.constant 5.000000e-01 : f32
    %211 = vector.broadcast %cst_75 : f32 to vector<8x128xf32>
    %212 = arith.mulf %211, %210 : vector<8x128xf32>
    %213 = math.tanh %212 : vector<8x128xf32>
    %cst_76 = arith.constant 1.000000e+00 : f32
    %214 = vector.broadcast %cst_76 : f32 to vector<8x128xf32>
    %215 = arith.addf %213, %214 : vector<8x128xf32>
    %cst_77 = arith.constant 5.000000e-01 : f32
    %216 = vector.broadcast %cst_77 : f32 to vector<8x128xf32>
    %217 = arith.mulf %216, %215 : vector<8x128xf32>
    %218 = arith.mulf %207, %177 : vector<8x128xf32>
    %219 = arith.mulf %199, %209 : vector<8x128xf32>
    %220 = arith.addf %218, %219 : vector<8x128xf32>
    %221 = math.tanh %220 : vector<8x128xf32>
    %222 = arith.mulf %217, %221 : vector<8x128xf32>
    %223 = arith.index_cast %c4_i32 : i32 to index
    %c0_78 = arith.constant 0 : index
    %c0_79 = arith.constant 0 : index
    %224 = vector.load %arg5[%223, %c0_78, %c0_79] : memref<8x8x128xf32, #tpu.memory_space<vmem>>, vector<1x8x128xf32>
    %225 = vector.shape_cast %224 : vector<1x8x128xf32> to vector<8x128xf32>
    %226 = vector.shape_cast %222 : vector<8x128xf32> to vector<1x8x128xf32>
    tpu.vector_store %arg5[%223, %c0_78, %c0_79], %226 {strides = array<i32>} : memref<8x8x128xf32, #tpu.memory_space<vmem>>, vector<1x8x128xf32>,
    %c5_i32 = arith.constant 5 : i32
    %227 = arith.index_cast %c5_i32 : i32 to index
    %c0_80 = arith.constant 0 : index
    %c0_81 = arith.constant 0 : index
    %228 = vector.load %arg1[%227, %c0_80, %c0_81] : memref<8x8x1xf32, #tpu.memory_space<vmem>>, vector<1x8x1xf32>
    %229 = vector.shape_cast %228 : vector<1x8x1xf32> to vector<8x1xf32>
    %cst_82 = arith.constant dense<0.000000e+00> : vector<8x512xf32>
    %230 = tpu.matmul %222, %3, %cst_82 {dimension_numbers = #tpu.dot_dimension_numbers<[1], [0], [0], [1], [0, 0, 1, 1], [], []>} : vector<8x128xf32>, vector<128x512xf32>, vector<8x512xf32> -> vector<8x512xf32>
    %231 = vector.broadcast %229 : vector<8x1xf32> to vector<8x512xf32>
    %232 = arith.mulf %231, %6 : vector<8x512xf32>
    %233 = arith.addf %230, %232 : vector<8x512xf32>
    %234 = arith.addf %233, %9 : vector<8x512xf32>
    %235 = vector.extract_strided_slice %234 {offsets = [0, 0], sizes = [8, 128], strides = [1, 1]} : vector<8x512xf32> to vector<8x128xf32>
    %cst_83 = arith.constant 5.000000e-01 : f32
    %236 = vector.broadcast %cst_83 : f32 to vector<8x128xf32>
    %237 = arith.mulf %236, %235 : vector<8x128xf32>
    %238 = math.tanh %237 : vector<8x128xf32>
    %cst_84 = arith.constant 1.000000e+00 : f32
    %239 = vector.broadcast %cst_84 : f32 to vector<8x128xf32>
    %240 = arith.addf %238, %239 : vector<8x128xf32>
    %cst_85 = arith.constant 5.000000e-01 : f32
    %241 = vector.broadcast %cst_85 : f32 to vector<8x128xf32>
    %242 = arith.mulf %241, %240 : vector<8x128xf32>
    %243 = vector.extract_strided_slice %234 {offsets = [0, 128], sizes = [8, 128], strides = [1, 1]} : vector<8x512xf32> to vector<8x128xf32>
    %cst_86 = arith.constant 5.000000e-01 : f32
    %244 = vector.broadcast %cst_86 : f32 to vector<8x128xf32>
    %245 = arith.mulf %244, %243 : vector<8x128xf32>
    %246 = math.tanh %245 : vector<8x128xf32>
    %cst_87 = arith.constant 1.000000e+00 : f32
    %247 = vector.broadcast %cst_87 : f32 to vector<8x128xf32>
    %248 = arith.addf %246, %247 : vector<8x128xf32>
    %cst_88 = arith.constant 5.000000e-01 : f32
    %249 = vector.broadcast %cst_88 : f32 to vector<8x128xf32>
    %250 = arith.mulf %249, %248 : vector<8x128xf32>
    %251 = vector.extract_strided_slice %234 {offsets = [0, 256], sizes = [8, 128], strides = [1, 1]} : vector<8x512xf32> to vector<8x128xf32>
    %252 = math.tanh %251 : vector<8x128xf32>
    %253 = vector.extract_strided_slice %234 {offsets = [0, 384], sizes = [8, 128], strides = [1, 1]} : vector<8x512xf32> to vector<8x128xf32>
    %cst_89 = arith.constant 5.000000e-01 : f32
    %254 = vector.broadcast %cst_89 : f32 to vector<8x128xf32>
    %255 = arith.mulf %254, %253 : vector<8x128xf32>
    %256 = math.tanh %255 : vector<8x128xf32>
    %cst_90 = arith.constant 1.000000e+00 : f32
    %257 = vector.broadcast %cst_90 : f32 to vector<8x128xf32>
    %258 = arith.addf %256, %257 : vector<8x128xf32>
    %cst_91 = arith.constant 5.000000e-01 : f32
    %259 = vector.broadcast %cst_91 : f32 to vector<8x128xf32>
    %260 = arith.mulf %259, %258 : vector<8x128xf32>
    %261 = arith.mulf %250, %220 : vector<8x128xf32>
    %262 = arith.mulf %242, %252 : vector<8x128xf32>
    %263 = arith.addf %261, %262 : vector<8x128xf32>
    %264 = math.tanh %263 : vector<8x128xf32>
    %265 = arith.mulf %260, %264 : vector<8x128xf32>
    %266 = arith.index_cast %c5_i32 : i32 to index
    %c0_92 = arith.constant 0 : index
    %c0_93 = arith.constant 0 : index
    %267 = vector.load %arg5[%266, %c0_92, %c0_93] : memref<8x8x128xf32, #tpu.memory_space<vmem>>, vector<1x8x128xf32>
    %268 = vector.shape_cast %267 : vector<1x8x128xf32> to vector<8x128xf32>
    %269 = vector.shape_cast %265 : vector<8x128xf32> to vector<1x8x128xf32>
    tpu.vector_store %arg5[%266, %c0_92, %c0_93], %269 {strides = array<i32>} : memref<8x8x128xf32, #tpu.memory_space<vmem>>, vector<1x8x128xf32>,
    %c6_i32 = arith.constant 6 : i32
    %270 = arith.index_cast %c6_i32 : i32 to index
    %c0_94 = arith.constant 0 : index
    %c0_95 = arith.constant 0 : index
    %271 = vector.load %arg1[%270, %c0_94, %c0_95] : memref<8x8x1xf32, #tpu.memory_space<vmem>>, vector<1x8x1xf32>
    %272 = vector.shape_cast %271 : vector<1x8x1xf32> to vector<8x1xf32>
    %cst_96 = arith.constant dense<0.000000e+00> : vector<8x512xf32>
    %273 = tpu.matmul %265, %3, %cst_96 {dimension_numbers = #tpu.dot_dimension_numbers<[1], [0], [0], [1], [0, 0, 1, 1], [], []>} : vector<8x128xf32>, vector<128x512xf32>, vector<8x512xf32> -> vector<8x512xf32>
    %274 = vector.broadcast %272 : vector<8x1xf32> to vector<8x512xf32>
    %275 = arith.mulf %274, %6 : vector<8x512xf32>
    %276 = arith.addf %273, %275 : vector<8x512xf32>
    %277 = arith.addf %276, %9 : vector<8x512xf32>
    %278 = vector.extract_strided_slice %277 {offsets = [0, 0], sizes = [8, 128], strides = [1, 1]} : vector<8x512xf32> to vector<8x128xf32>
    %cst_97 = arith.constant 5.000000e-01 : f32
    %279 = vector.broadcast %cst_97 : f32 to vector<8x128xf32>
    %280 = arith.mulf %279, %278 : vector<8x128xf32>
    %281 = math.tanh %280 : vector<8x128xf32>
    %cst_98 = arith.constant 1.000000e+00 : f32
    %282 = vector.broadcast %cst_98 : f32 to vector<8x128xf32>
    %283 = arith.addf %281, %282 : vector<8x128xf32>
    %cst_99 = arith.constant 5.000000e-01 : f32
    %284 = vector.broadcast %cst_99 : f32 to vector<8x128xf32>
    %285 = arith.mulf %284, %283 : vector<8x128xf32>
    %286 = vector.extract_strided_slice %277 {offsets = [0, 128], sizes = [8, 128], strides = [1, 1]} : vector<8x512xf32> to vector<8x128xf32>
    %cst_100 = arith.constant 5.000000e-01 : f32
    %287 = vector.broadcast %cst_100 : f32 to vector<8x128xf32>
    %288 = arith.mulf %287, %286 : vector<8x128xf32>
    %289 = math.tanh %288 : vector<8x128xf32>
    %cst_101 = arith.constant 1.000000e+00 : f32
    %290 = vector.broadcast %cst_101 : f32 to vector<8x128xf32>
    %291 = arith.addf %289, %290 : vector<8x128xf32>
    %cst_102 = arith.constant 5.000000e-01 : f32
    %292 = vector.broadcast %cst_102 : f32 to vector<8x128xf32>
    %293 = arith.mulf %292, %291 : vector<8x128xf32>
    %294 = vector.extract_strided_slice %277 {offsets = [0, 256], sizes = [8, 128], strides = [1, 1]} : vector<8x512xf32> to vector<8x128xf32>
    %295 = math.tanh %294 : vector<8x128xf32>
    %296 = vector.extract_strided_slice %277 {offsets = [0, 384], sizes = [8, 128], strides = [1, 1]} : vector<8x512xf32> to vector<8x128xf32>
    %cst_103 = arith.constant 5.000000e-01 : f32
    %297 = vector.broadcast %cst_103 : f32 to vector<8x128xf32>
    %298 = arith.mulf %297, %296 : vector<8x128xf32>
    %299 = math.tanh %298 : vector<8x128xf32>
    %cst_104 = arith.constant 1.000000e+00 : f32
    %300 = vector.broadcast %cst_104 : f32 to vector<8x128xf32>
    %301 = arith.addf %299, %300 : vector<8x128xf32>
    %cst_105 = arith.constant 5.000000e-01 : f32
    %302 = vector.broadcast %cst_105 : f32 to vector<8x128xf32>
    %303 = arith.mulf %302, %301 : vector<8x128xf32>
    %304 = arith.mulf %293, %263 : vector<8x128xf32>
    %305 = arith.mulf %285, %295 : vector<8x128xf32>
    %306 = arith.addf %304, %305 : vector<8x128xf32>
    %307 = math.tanh %306 : vector<8x128xf32>
    %308 = arith.mulf %303, %307 : vector<8x128xf32>
    %309 = arith.index_cast %c6_i32 : i32 to index
    %c0_106 = arith.constant 0 : index
    %c0_107 = arith.constant 0 : index
    %310 = vector.load %arg5[%309, %c0_106, %c0_107] : memref<8x8x128xf32, #tpu.memory_space<vmem>>, vector<1x8x128xf32>
    %311 = vector.shape_cast %310 : vector<1x8x128xf32> to vector<8x128xf32>
    %312 = vector.shape_cast %308 : vector<8x128xf32> to vector<1x8x128xf32>
    tpu.vector_store %arg5[%309, %c0_106, %c0_107], %312 {strides = array<i32>} : memref<8x8x128xf32, #tpu.memory_space<vmem>>, vector<1x8x128xf32>,
    %c7_i32 = arith.constant 7 : i32
    %313 = arith.index_cast %c7_i32 : i32 to index
    %c0_108 = arith.constant 0 : index
    %c0_109 = arith.constant 0 : index
    %314 = vector.load %arg1[%313, %c0_108, %c0_109] : memref<8x8x1xf32, #tpu.memory_space<vmem>>, vector<1x8x1xf32>
    %315 = vector.shape_cast %314 : vector<1x8x1xf32> to vector<8x1xf32>
    %cst_110 = arith.constant dense<0.000000e+00> : vector<8x512xf32>
    %316 = tpu.matmul %308, %3, %cst_110 {dimension_numbers = #tpu.dot_dimension_numbers<[1], [0], [0], [1], [0, 0, 1, 1], [], []>} : vector<8x128xf32>, vector<128x512xf32>, vector<8x512xf32> -> vector<8x512xf32>
    %317 = vector.broadcast %315 : vector<8x1xf32> to vector<8x512xf32>
    %318 = arith.mulf %317, %6 : vector<8x512xf32>
    %319 = arith.addf %316, %318 : vector<8x512xf32>
    %320 = arith.addf %319, %9 : vector<8x512xf32>
    %321 = vector.extract_strided_slice %320 {offsets = [0, 0], sizes = [8, 128], strides = [1, 1]} : vector<8x512xf32> to vector<8x128xf32>
    %cst_111 = arith.constant 5.000000e-01 : f32
    %322 = vector.broadcast %cst_111 : f32 to vector<8x128xf32>
    %323 = arith.mulf %322, %321 : vector<8x128xf32>
    %324 = math.tanh %323 : vector<8x128xf32>
    %cst_112 = arith.constant 1.000000e+00 : f32
    %325 = vector.broadcast %cst_112 : f32 to vector<8x128xf32>
    %326 = arith.addf %324, %325 : vector<8x128xf32>
    %cst_113 = arith.constant 5.000000e-01 : f32
    %327 = vector.broadcast %cst_113 : f32 to vector<8x128xf32>
    %328 = arith.mulf %327, %326 : vector<8x128xf32>
    %329 = vector.extract_strided_slice %320 {offsets = [0, 128], sizes = [8, 128], strides = [1, 1]} : vector<8x512xf32> to vector<8x128xf32>
    %cst_114 = arith.constant 5.000000e-01 : f32
    %330 = vector.broadcast %cst_114 : f32 to vector<8x128xf32>
    %331 = arith.mulf %330, %329 : vector<8x128xf32>
    %332 = math.tanh %331 : vector<8x128xf32>
    %cst_115 = arith.constant 1.000000e+00 : f32
    %333 = vector.broadcast %cst_115 : f32 to vector<8x128xf32>
    %334 = arith.addf %332, %333 : vector<8x128xf32>
    %cst_116 = arith.constant 5.000000e-01 : f32
    %335 = vector.broadcast %cst_116 : f32 to vector<8x128xf32>
    %336 = arith.mulf %335, %334 : vector<8x128xf32>
    %337 = vector.extract_strided_slice %320 {offsets = [0, 256], sizes = [8, 128], strides = [1, 1]} : vector<8x512xf32> to vector<8x128xf32>
    %338 = math.tanh %337 : vector<8x128xf32>
    %339 = vector.extract_strided_slice %320 {offsets = [0, 384], sizes = [8, 128], strides = [1, 1]} : vector<8x512xf32> to vector<8x128xf32>
    %cst_117 = arith.constant 5.000000e-01 : f32
    %340 = vector.broadcast %cst_117 : f32 to vector<8x128xf32>
    %341 = arith.mulf %340, %339 : vector<8x128xf32>
    %342 = math.tanh %341 : vector<8x128xf32>
    %cst_118 = arith.constant 1.000000e+00 : f32
    %343 = vector.broadcast %cst_118 : f32 to vector<8x128xf32>
    %344 = arith.addf %342, %343 : vector<8x128xf32>
    %cst_119 = arith.constant 5.000000e-01 : f32
    %345 = vector.broadcast %cst_119 : f32 to vector<8x128xf32>
    %346 = arith.mulf %345, %344 : vector<8x128xf32>
    %347 = arith.mulf %336, %306 : vector<8x128xf32>
    %348 = arith.mulf %328, %338 : vector<8x128xf32>
    %349 = arith.addf %347, %348 : vector<8x128xf32>
    %350 = math.tanh %349 : vector<8x128xf32>
    %351 = arith.mulf %346, %350 : vector<8x128xf32>
    %352 = arith.index_cast %c7_i32 : i32 to index
    %c0_120 = arith.constant 0 : index
    %c0_121 = arith.constant 0 : index
    %353 = vector.load %arg5[%352, %c0_120, %c0_121] : memref<8x8x128xf32, #tpu.memory_space<vmem>>, vector<1x8x128xf32>
    %354 = vector.shape_cast %353 : vector<1x8x128xf32> to vector<8x128xf32>
    %355 = vector.shape_cast %351 : vector<8x128xf32> to vector<1x8x128xf32>
    tpu.vector_store %arg5[%352, %c0_120, %c0_121], %355 {strides = array<i32>} : memref<8x8x128xf32, #tpu.memory_space<vmem>>, vector<1x8x128xf32>,
    %c8_i32 = arith.constant 8 : i32
    %c0_122 = arith.constant 0 : index
    %c0_123 = arith.constant 0 : index
    %356 = vector.load %arg6[%c0_122, %c0_123] : memref<8x128xf32, #tpu.memory_space<vmem>>, vector<8x128xf32>
    tpu.vector_store %arg6[%c0_122, %c0_123], %351 {strides = array<i32>} : memref<8x128xf32, #tpu.memory_space<vmem>>, vector<8x128xf32>,
    %c0_124 = arith.constant 0 : index
    %c0_125 = arith.constant 0 : index
    %357 = vector.load %arg7[%c0_124, %c0_125] : memref<8x128xf32, #tpu.memory_space<vmem>>, vector<8x128xf32>
    tpu.vector_store %arg7[%c0_124, %c0_125], %349 {strides = array<i32>} : memref<8x128xf32, #tpu.memory_space<vmem>>, vector<8x128xf32>,
    return
  }
  func.func @transform_0(%arg0: i32) -> (i32, i32, i32) {
    %c0_i32 = arith.constant 0 : i32
    %c0_i32_0 = arith.constant 0 : i32
    %c0_i32_1 = arith.constant 0 : i32
    return %arg0, %c0_i32, %c0_i32_0 : i32, i32, i32
  }
  func.func @transform_1(%arg0: i32) -> (i32, i32) {
    %c0_i32 = arith.constant 0 : i32
    %c0_i32_0 = arith.constant 0 : i32
    %c0_i32_1 = arith.constant 0 : i32
    return %c0_i32, %c0_i32_0 : i32, i32
  }
  func.func @transform_2(%arg0: i32) -> (i32, i32) {
    %c0_i32 = arith.constant 0 : i32
    %c0_i32_0 = arith.constant 0 : i32
    %c0_i32_1 = arith.constant 0 : i32
    return %c0_i32, %c0_i32_0 : i32, i32
  }
  func.func @transform_3(%arg0: i32) -> (i32, i32) {
    %c0_i32 = arith.constant 0 : i32
    %c0_i32_0 = arith.constant 0 : i32
    %c0_i32_1 = arith.constant 0 : i32
    return %c0_i32, %c0_i32_0 : i32, i32
  }
  func.func @transform_4(%arg0: i32) -> (i32, i32, i32) {
    %c0_i32 = arith.constant 0 : i32
    %c0_i32_0 = arith.constant 0 : i32
    %c0_i32_1 = arith.constant 0 : i32
    return %arg0, %c0_i32, %c0_i32_0 : i32, i32, i32
  }
}

</mosaic_0001>

<bundles_post_ra>
// kernel: tpu_custom_call.1
= control target key start
LH: loop header
LB: loop body
LE: loop exit
PB: predicated region body
PF: predicated region fallthrough
CT: control target
= control target key end

     0   :  { %9 = vsyncpa [#allocation5], 0  ;;  %s2216_s0 = inlined_call_operand.vmem [shape: f32[8,8,1], index: 0, kind: input, shape index: {}]   ;;  %s2217_s1 = inlined_call_operand.vmem [shape: f32[1,512], index: 1, kind: input, shape index: {}]   ;;  %s2218_s2 = inlined_call_operand.vmem [shape: f32[1,512], index: 2, kind: input, shape index: {}]   ;;  %s2219_s3 = inlined_call_operand.hbm [shape: f32[128,512], index: 3, kind: input, shape index: {}]   ;;  %s2220_s4 = inlined_call_operand.hbm [shape: f32[8,8,128], index: 4, kind: output, shape index: {}]  }
   0x1   :  { %10 = vsyncpa [#allocation6], 0  ;;  %s21_s17 = sshll.u32 %s2219_s3, 4  ;;  %s1279_s18 = smov [#allocation4]   ;;  %s22_s17 = int_to_ptr.hbm [resolvable:$true] %s21_s17 }
   0x2   :  { %s23_s19 = sshll.u32 %s1279_s18, 4  ;;  %s1280_s20 = smov 512   ;;  %s24_s19 = int_to_ptr.vmem [resolvable:$true] %s23_s19 }
   0x3   :  { %s1281_s21 = smov 32  }
   0x4   :  { %29 = dma.hbm_to_vmem [thread:$0]  %s22_s17, 8192, %s24_s19, [#allocation5], %s1280_s20, %s1280_s20, %s1281_s21  }
   0x5   :  { %1275 = dma.done.wait [#allocation5], 8192  }
   0x6   :  { %1276 = vsyncadd [#allocation5], 4294959104  ;;  %v1282_v0 = vmov 0   ;;  %v1315_v1 = vld [vmem:[#allocation4 + $0x1e0] sm:$0xff]  ;;  %v1317_v2 = vld [vmem:[#allocation4 + $0x1e8] sm:$0xff]  ;;  %s1052_s16 = sshll.u32 %s2220_s4, 4  ;;  %s1053_s16 = int_to_ptr.hbm [resolvable:$true] %s1052_s16 }
   0x7   :  { %1080 = vset.pattern.permute.xlu0 %v1282_v0  ;;  %1081 = vset.pattern.permute.xlu1 %v1282_v0  ;;  %v1319_v3 = vld [vmem:[#allocation4 + $0x1f0] sm:$0xff]  ;;  %v1323_v4 = vld [vmem:[#allocation4 + $0x1f8] sm:$0xff]  ;;  %v1325_v5 = vld [vmem:[#allocation4 + $0x1c0] sm:$0xff]  ;;  %s1285_s17 = smov 128   ;;  %s1286_s18 = smov 8  }
   0x8   :  { %1082 = vset.pattern.permute.xlu2 %v1282_v0  ;;  %136 = vmatpush.msra.mxu0 %v1315_v1  ;;  %v1327_v6 = vld [vmem:[#allocation4 + $0x1c8] sm:$0xff]  ;;  %v1331_v7 = vld [vmem:[#allocation4 + $0x1d0] sm:$0xff]  ;;  %v1333_v8 = vld [vmem:[#allocation4 + $0x1d8] sm:$0xff] }
   0x9   :  { %156 = vmatpush.msra.mxu1 %v1317_v2  ;;  %176 = vmatpush.msra.mxu2 %v1319_v3  ;;  %v1335_v9 = vld [vmem:[#allocation4 + $0x1a0] sm:$0xff]  ;;  %v1339_v10 = vld [vmem:[#allocation4 + $0x1a8] sm:$0xff]  ;;  %v1341_v11 = vld [vmem:[#allocation4 + $0x1b0] sm:$0xff] }
   0xa   :  { %196 = vmatpush.msra.mxu3 %v1323_v4  ;;  %137 = vmatpush.msra.mxu0 %v1325_v5  ;;  %v1343_v12 = vld [vmem:[#allocation4 + $0x1b8] sm:$0xff]  ;;  %v1347_v13 = vld [vmem:[#allocation4 + $0x180] sm:$0xff]  ;;  %v1349_v14 = vld [vmem:[#allocation4 + $0x188] sm:$0xff] }
   0xb   :  { %157 = vmatpush.msra.mxu1 %v1327_v6  ;;  %177 = vmatpush.msra.mxu2 %v1331_v7  ;;  %v1353_v15 = vld [vmem:[#allocation4 + $0x190] sm:$0xff]  ;;  %v1355_v16 = vld [vmem:[#allocation4 + $0x198] sm:$0xff]  ;;  %v1359_v17 = vld [vmem:[#allocation4 + $0x160] sm:$0xff] }
   0xc   :  { %197 = vmatpush.msra.mxu3 %v1333_v8  ;;  %138 = vmatpush.msra.mxu0 %v1335_v9  ;;  %v1361_v18 = vld [vmem:[#allocation4 + $0x168] sm:$0xff]  ;;  %v1365_v19 = vld [vmem:[#allocation4 + $0x170] sm:$0xff]  ;;  %v1367_v20 = vld [vmem:[#allocation4 + $0x178] sm:$0xff] }
   0xd   :  { %158 = vmatpush.msra.mxu1 %v1339_v10  ;;  %178 = vmatpush.msra.mxu2 %v1341_v11  ;;  %v1371_v21 = vld [vmem:[#allocation4 + $0x140] sm:$0xff]  ;;  %v1373_v22 = vld [vmem:[#allocation4 + $0x148] sm:$0xff]  ;;  %v1377_v23 = vld [vmem:[#allocation4 + $0x150] sm:$0xff] }
   0xe   :  { %198 = vmatpush.msra.mxu3 %v1343_v12  ;;  %139 = vmatpush.msra.mxu0 %v1347_v13  ;;  %v1379_v24 = vld [vmem:[#allocation4 + $0x158] sm:$0xff]  ;;  %v1383_v25 = vld [vmem:[#allocation4 + $0x120] sm:$0xff]  ;;  %v1385_v26 = vld [vmem:[#allocation4 + $0x128] sm:$0xff] }
   0xf   :  { %159 = vmatpush.msra.mxu1 %v1349_v14  ;;  %179 = vmatpush.msra.mxu2 %v1353_v15  ;;  %v1389_v27 = vld [vmem:[#allocation4 + $0x130] sm:$0xff]  ;;  %v1391_v28 = vld [vmem:[#allocation4 + $0x138] sm:$0xff]  ;;  %v1395_v29 = vld [vmem:[#allocation4 + $0x100] sm:$0xff] }
  0x10   :  { %199 = vmatpush.msra.mxu3 %v1355_v16  ;;  %140 = vmatpush.msra.mxu0 %v1359_v17  ;;  %v1397_v30 = vld [vmem:[#allocation4 + $0x108] sm:$0xff]  ;;  %v1401_v31 = vld [vmem:[#allocation4 + $0x110] sm:$0xff]  ;;  %v1403_v32 = vld [vmem:[#allocation4 + $0x118] sm:$0xff] }
  0x11   :  { %160 = vmatpush.msra.mxu1 %v1361_v18  ;;  %180 = vmatpush.msra.mxu2 %v1365_v19  ;;  %v1407_v33 = vld [vmem:[#allocation4 + $0xe0] sm:$0xff]  ;;  %v1409_v34 = vld [vmem:[#allocation4 + $0xe8] sm:$0xff]  ;;  %v1413_v35 = vld [vmem:[#allocation4 + $0xf0] sm:$0xff] }
  0x12   :  { %200 = vmatpush.msra.mxu3 %v1367_v20  ;;  %141 = vmatpush.msra.mxu0 %v1371_v21  ;;  %v1415_v36 = vld [vmem:[#allocation4 + $0xf8] sm:$0xff]  ;;  %v1419_v37 = vld [vmem:[#allocation4 + $0xc0] sm:$0xff]  ;;  %v1421_v38 = vld [vmem:[#allocation4 + $0xc8] sm:$0xff] }
  0x13   :  { %161 = vmatpush.msra.mxu1 %v1373_v22  ;;  %181 = vmatpush.msra.mxu2 %v1377_v23  ;;  %v1425_v39 = vld [vmem:[#allocation4 + $0xd0] sm:$0xff]  ;;  %v1427_v40 = vld [vmem:[#allocation4 + $0xd8] sm:$0xff]  ;;  %v1431_v41 = vld [vmem:[#allocation4 + $0xa0] sm:$0xff] }
  0x14   :  { %201 = vmatpush.msra.mxu3 %v1379_v24  ;;  %142 = vmatpush.msra.mxu0 %v1383_v25  ;;  %v1433_v42 = vld [vmem:[#allocation4 + $0xa8] sm:$0xff]  ;;  %v1437_v43 = vld [vmem:[#allocation4 + $0xb0] sm:$0xff]  ;;  %v1439_v44 = vld [vmem:[#allocation4 + $0xb8] sm:$0xff] }
  0x15   :  { %162 = vmatpush.msra.mxu1 %v1385_v26  ;;  %182 = vmatpush.msra.mxu2 %v1389_v27  ;;  %2327 = vst [vmem:[#allocation10_spill] sm:$0xff] %v1433_v42  ;;  %v1443_v45 = vld [vmem:[#allocation4 + $0x80] sm:$0xff]  ;;  %v1445_v46 = vld [vmem:[#allocation4 + $0x88] sm:$0xff]  ;;  %v1449_v47 = vld [vmem:[#allocation4 + $0x90] sm:$0xff] }
  0x16   :  { %202 = vmatpush.msra.mxu3 %v1391_v28  ;;  %143 = vmatpush.msra.mxu0 %v1395_v29  ;;  %2328 = vst [vmem:[#allocation11_spill] sm:$0xff] %v1437_v43  ;;  %v1451_v48 = vld [vmem:[#allocation4 + $0x98] sm:$0xff]  ;;  %v126_v49 = vld [vmem:[%s2216_s0] sm:$0xff]  ;;  %v1462_v51 = vld [vmem:[#allocation4 + $0x68] sm:$0xff] }
  0x17   :  { %163 = vmatpush.msra.mxu1 %v1397_v30  ;;  %183 = vmatpush.msra.mxu2 %v1401_v31  ;;  %2329 = vst [vmem:[#allocation12_spill] sm:$0xff] %v1439_v44  ;;  %v1458_v50 = vld [vmem:[#allocation4 + $0x60] sm:$0xff]  ;;  %v1464_v52 = vld [vmem:[#allocation4 + $0x70] sm:$0xff]  ;;  %v1468_v53 = vld [vmem:[#allocation4 + $0x78] sm:$0xff] }
  0x18   :  { %203 = vmatpush.msra.mxu3 %v1403_v32  ;;  %144 = vmatpush.msra.mxu0 %v1407_v33  ;;  %2330 = vst [vmem:[#allocation13_spill] sm:$0xff] %v1443_v45  ;;  %v1470_v54 = vld [vmem:[#allocation4 + $0x40] sm:$0xff]  ;;  %v1473_v55 = vld [vmem:[#allocation4 + $0x48] sm:$0xff]  ;;  %v1475_v56 = vld [vmem:[#allocation4 + $0x50] sm:$0xff] }
  0x19   :  { %164 = vmatpush.msra.mxu1 %v1409_v34  ;;  %184 = vmatpush.msra.mxu2 %v1413_v35  ;;  %2331 = vst [vmem:[#allocation14_spill] sm:$0xff] %v1445_v46  ;;  %v1479_v57 = vld [vmem:[#allocation4 + $0x58] sm:$0xff]  ;;  %v1481_v58 = vld [vmem:[#allocation4 + $0x20] sm:$0xff]  ;;  %v1485_v59 = vld [vmem:[#allocation4 + $0x28] sm:$0xff] }
  0x1a   :  { %204 = vmatpush.msra.mxu3 %v1415_v36  ;;  %145 = vmatpush.msra.mxu0 %v1419_v37  ;;  %2332 = vst [vmem:[#allocation15_spill] sm:$0xff] %v1449_v47  ;;  %v1487_v60 = vld [vmem:[#allocation4 + $0x30] sm:$0xff]  ;;  %v1491_v61 = vld [vmem:[#allocation4 + $0x38] sm:$0xff]  ;;  %v1493_v62 = vld [vmem:[#allocation4] sm:$0xff] }
  0x1b   :  { %165 = vmatpush.msra.mxu1 %v1421_v38  ;;  %185 = vmatpush.msra.mxu2 %v1425_v39  ;;  %2333 = vst [vmem:[#allocation16_spill] sm:$0xff] %v1451_v48  ;;  %v1497_v63 = vld [vmem:[#allocation4 + $0x8] sm:$0xff]  ;;  %v1499_v0 = vld [vmem:[#allocation4 + $0x10] sm:$0xff] }
  0x1c   :  { %205 = vmatpush.msra.mxu3 %v1427_v40  ;;  %146 = vmatpush.msra.mxu0 %v1431_v41  ;;  %2334 = vst [vmem:[#allocation17_spill] sm:$0xff] %v1458_v50 }
  0x1d   :  { %166 = vmatpush.msra.mxu1 %v1433_v42  ;;  %186 = vmatpush.msra.mxu2 %v1437_v43  ;;  %2335 = vst [vmem:[#allocation18_spill] sm:$0xff] %v1462_v51 }
  0x1e   :  { %206 = vmatpush.msra.mxu3 %v1439_v44  ;;  %147 = vmatpush.msra.mxu0 %v1443_v45  ;;  %2336 = vst [vmem:[#allocation19_spill] sm:$0xff] %v1464_v52 }
  0x1f   :  { %167 = vmatpush.msra.mxu1 %v1445_v46  ;;  %187 = vmatpush.msra.mxu2 %v1449_v47  ;;  %2337 = vst [vmem:[#allocation20_spill] sm:$0xff] %v1468_v53 }
  0x20   :  { %207 = vmatpush.msra.mxu3 %v1451_v48  ;;  %2338 = vst [vmem:[#allocation21_spill] sm:$0xff] %v1470_v54  ;;  %129 = vperm.xlu0 %1080, %v126_v49   ;;  %v1503_v49 = vld [vmem:[#allocation4 + $0x18] sm:$0xff] }
  0x21   :  { %148 = vmatpush.msra.mxu0 %v1458_v50  ;;  %2339 = vst [vmem:[#allocation22_spill] sm:$0xff] %v1473_v55  ;;  %168 = vmatpush.msra.mxu1 %v1462_v51 }
  0x22   :  { %2340 = vst [vmem:[#allocation23_spill] sm:$0xff] %v1475_v56  ;;  %188 = vmatpush.msra.mxu2 %v1464_v52  ;;  %208 = vmatpush.msra.mxu3 %v1468_v53 }
  0x23   :  { %2341 = vst [vmem:[#allocation24_spill] sm:$0xff] %v1479_v57  ;;  %149 = vmatpush.msra.mxu0 %v1470_v54  ;;  %169 = vmatpush.msra.mxu1 %v1473_v55 }
  0x24   :  { %2342 = vst [vmem:[#allocation25_spill] sm:$0xff] %v1481_v58  ;;  %189 = vmatpush.msra.mxu2 %v1475_v56  ;;  %209 = vmatpush.msra.mxu3 %v1479_v57  ;;  %v1283_v57 = vmov 0.0  }
  0x25   :  { %2343 = vst [vmem:[#allocation26_spill] sm:$0xff] %v1485_v59  ;;  %150 = vmatpush.msra.mxu0 %v1481_v58  ;;  %170 = vmatpush.msra.mxu1 %v1485_v59  ;;  %v1065_v58 = vld [vmem:[%s2216_s0 + $0x8] sm:$0xff] }
  0x26   :  { %2344 = vst [vmem:[#allocation27_spill] sm:$0xff] %v1487_v60  ;;  %190 = vmatpush.msra.mxu2 %v1487_v60  ;;  %210 = vmatpush.msra.mxu3 %v1491_v61 }
  0x27   :  { %2345 = vst [vmem:[#allocation28_spill] sm:$0xff] %v1491_v61  ;;  %151 = vmatpush.msra.mxu0 %v1493_v62  ;;  %171 = vmatpush.msra.mxu1 %v1497_v63 }
  0x28   :  { %2346 = vst [vmem:[#allocation29_spill] sm:$0xff] %v1493_v62  ;;  %191 = vmatpush.msra.mxu2 %v1499_v0  ;;  %211 = vmatpush.msra.mxu3 %v1503_v49 }
  0x29   :  { %2347 = vst [vmem:[#allocation30_spill] sm:$0xff] %v1497_v63  ;;  %152 = vmatmul.f32.vlgmr.msra.gmra.mxu0 %v1283_v57  ;;  %172 = vmatmul.f32.vlgmr.msra.gmra.mxu1 %v1283_v57 }
  0x2a   :  { %2348 = vst [vmem:[#allocation31_spill] sm:$0xff] %v1499_v0  ;;  %192 = vmatmul.f32.vlgmr.msra.gmra.mxu2 %v1283_v57  ;;  %212 = vmatmul.f32.vlgmr.msra.gmra.mxu3 %v1283_v57  ;;  %v1070_v57 = vld [vmem:[%s2216_s0 + $0x30] sm:$0xff] }
  0x2b   :  { %2349 = vst [vmem:[#allocation32_spill] sm:$0xff] %v1503_v49  ;;  %243 = vperm.xlu0 %1080, %v1065_v58   ;;  %250 = vmatpush.msrb.mxu0 %v1315_v1  ;;  %v2350_v58 = vld [vmem:[#allocation24_spill] sm:$0xff] }
  0x2c   :  { %270 = vmatpush.msrb.mxu1 %v1317_v2  ;;  %290 = vmatpush.msrb.mxu2 %v1319_v3 }
  0x2d   :  { %310 = vmatpush.msrb.mxu3 %v1323_v4  ;;  %251 = vmatpush.msrb.mxu0 %v1325_v5 }
  0x2e   :  { %271 = vmatpush.msrb.mxu1 %v1327_v6  ;;  %291 = vmatpush.msrb.mxu2 %v1331_v7 }
  0x2f   :  { %311 = vmatpush.msrb.mxu3 %v1333_v8  ;;  %252 = vmatpush.msrb.mxu0 %v1335_v9 }
  0x30   :  { %272 = vmatpush.msrb.mxu1 %v1339_v10  ;;  %292 = vmatpush.msrb.mxu2 %v1341_v11 }
  0x31   :  { %312 = vmatpush.msrb.mxu3 %v1343_v12  ;;  %253 = vmatpush.msrb.mxu0 %v1347_v13 }
  0x32   :  { %273 = vmatpush.msrb.mxu1 %v1349_v14  ;;  %293 = vmatpush.msrb.mxu2 %v1353_v15 }
  0x33   :  { %818 = vperm.xlu0 %1080, %v1070_v57   ;;  %313 = vmatpush.msrb.mxu3 %v1355_v16  ;;  %v2351_v57 = vld [vmem:[#allocation25_spill] sm:$0xff] }
  0x34   :  { %254 = vmatpush.msrb.mxu0 %v1359_v17  ;;  %274 = vmatpush.msrb.mxu1 %v1361_v18 }
  0x35   :  { %294 = vmatpush.msrb.mxu2 %v1365_v19  ;;  %314 = vmatpush.msrb.mxu3 %v1367_v20 }
  0x36   :  { %255 = vmatpush.msrb.mxu0 %v1371_v21  ;;  %275 = vmatpush.msrb.mxu1 %v1373_v22 }
  0x37   :  { %295 = vmatpush.msrb.mxu2 %v1377_v23  ;;  %315 = vmatpush.msrb.mxu3 %v1379_v24 }
  0x38   :  { %256 = vmatpush.msrb.mxu0 %v1383_v25  ;;  %276 = vmatpush.msrb.mxu1 %v1385_v26 }
  0x39   :  { %296 = vmatpush.msrb.mxu2 %v1389_v27  ;;  %316 = vmatpush.msrb.mxu3 %v1391_v28 }
  0x3a   :  { %257 = vmatpush.msrb.mxu0 %v1395_v29  ;;  %277 = vmatpush.msrb.mxu1 %v1397_v30 }
  0x3b   :  { %297 = vmatpush.msrb.mxu2 %v1401_v31  ;;  %317 = vmatpush.msrb.mxu3 %v1403_v32 }
  0x3c   :  { %258 = vmatpush.msrb.mxu0 %v1407_v33  ;;  %278 = vmatpush.msrb.mxu1 %v1409_v34 }
  0x3d   :  { %298 = vmatpush.msrb.mxu2 %v1413_v35  ;;  %318 = vmatpush.msrb.mxu3 %v1415_v36 }
  0x3e   :  { %259 = vmatpush.msrb.mxu0 %v1419_v37  ;;  %279 = vmatpush.msrb.mxu1 %v1421_v38 }
  0x3f   :  { %299 = vmatpush.msrb.mxu2 %v1425_v39  ;;  %319 = vmatpush.msrb.mxu3 %v1427_v40 }
  0x40   :  { %260 = vmatpush.msrb.mxu0 %v1431_v41  ;;  %280 = vmatpush.msrb.mxu1 %v1433_v42 }
  0x41   :  { %300 = vmatpush.msrb.mxu2 %v1437_v43  ;;  %320 = vmatpush.msrb.mxu3 %v1439_v44 }
  0x42   :  { %261 = vmatpush.msrb.mxu0 %v1443_v45  ;;  %281 = vmatpush.msrb.mxu1 %v1445_v46 }
  0x43   :  { %301 = vmatpush.msrb.mxu2 %v1449_v47  ;;  %321 = vmatpush.msrb.mxu3 %v1451_v48 }
  0x44   :  { %262 = vmatpush.msrb.mxu0 %v1458_v50  ;;  %282 = vmatpush.msrb.mxu1 %v1462_v51 }
  0x45   :  { %302 = vmatpush.msrb.mxu2 %v1464_v52  ;;  %322 = vmatpush.msrb.mxu3 %v1468_v53 }
  0x46   :  { %263 = vmatpush.msrb.mxu0 %v1470_v54  ;;  %283 = vmatpush.msrb.mxu1 %v1473_v55 }
  0x47   :  { %303 = vmatpush.msrb.mxu2 %v1475_v56  ;;  %323 = vmatpush.msrb.mxu3 %v2350_v58 }
  0x48   :  { %264 = vmatpush.msrb.mxu0 %v2351_v57  ;;  %284 = vmatpush.msrb.mxu1 %v1485_v59 }
  0x49   :  { %304 = vmatpush.msrb.mxu2 %v1487_v60  ;;  %324 = vmatpush.msrb.mxu3 %v1491_v61 }
  0x4a   :  { %265 = vmatpush.msrb.mxu0 %v1493_v62  ;;  %285 = vmatpush.msrb.mxu1 %v1497_v63 }
  0x4b   :  { %305 = vmatpush.msrb.mxu2 %v1499_v0  ;;  %325 = vmatpush.msrb.mxu3 %v1503_v49 }
  0x4c   :  { %365 = vmatpush.msra.mxu0 %v1315_v1  ;;  %385 = vmatpush.msra.mxu1 %v1317_v2 }
  0x4d   :  { %405 = vmatpush.msra.mxu2 %v1319_v3  ;;  %425 = vmatpush.msra.mxu3 %v1323_v4 }
  0x4e   :  { %366 = vmatpush.msra.mxu0 %v1325_v5  ;;  %386 = vmatpush.msra.mxu1 %v1327_v6 }
  0x4f   :  { %406 = vmatpush.msra.mxu2 %v1331_v7  ;;  %426 = vmatpush.msra.mxu3 %v1333_v8 }
  0x50   :  { %367 = vmatpush.msra.mxu0 %v1335_v9  ;;  %387 = vmatpush.msra.mxu1 %v1339_v10 }
  0x51   :  { %407 = vmatpush.msra.mxu2 %v1341_v11  ;;  %427 = vmatpush.msra.mxu3 %v1343_v12 }
  0x52   :  { %368 = vmatpush.msra.mxu0 %v1347_v13  ;;  %388 = vmatpush.msra.mxu1 %v1349_v14 }
  0x53   :  { %408 = vmatpush.msra.mxu2 %v1353_v15  ;;  %428 = vmatpush.msra.mxu3 %v1355_v16 }
  0x54   :  { %369 = vmatpush.msra.mxu0 %v1359_v17  ;;  %389 = vmatpush.msra.mxu1 %v1361_v18 }
  0x55   :  { %409 = vmatpush.msra.mxu2 %v1365_v19  ;;  %429 = vmatpush.msra.mxu3 %v1367_v20 }
  0x56   :  { %370 = vmatpush.msra.mxu0 %v1371_v21  ;;  %390 = vmatpush.msra.mxu1 %v1373_v22 }
  0x57   :  { %410 = vmatpush.msra.mxu2 %v1377_v23  ;;  %430 = vmatpush.msra.mxu3 %v1379_v24 }
  0x58   :  { %371 = vmatpush.msra.mxu0 %v1383_v25  ;;  %391 = vmatpush.msra.mxu1 %v1385_v26 }
  0x59   :  { %411 = vmatpush.msra.mxu2 %v1389_v27  ;;  %431 = vmatpush.msra.mxu3 %v1391_v28 }
  0x5a   :  { %372 = vmatpush.msra.mxu0 %v1395_v29  ;;  %392 = vmatpush.msra.mxu1 %v1397_v30 }
  0x5b   :  { %412 = vmatpush.msra.mxu2 %v1401_v31  ;;  %432 = vmatpush.msra.mxu3 %v1403_v32 }
  0x5c   :  { %373 = vmatpush.msra.mxu0 %v1407_v33  ;;  %393 = vmatpush.msra.mxu1 %v1409_v34 }
  0x5d   :  { %413 = vmatpush.msra.mxu2 %v1413_v35  ;;  %433 = vmatpush.msra.mxu3 %v1415_v36 }
  0x5e   :  { %374 = vmatpush.msra.mxu0 %v1419_v37  ;;  %394 = vmatpush.msra.mxu1 %v1421_v38 }
  0x5f   :  { %414 = vmatpush.msra.mxu2 %v1425_v39  ;;  %434 = vmatpush.msra.mxu3 %v1427_v40 }
  0x60   :  { %375 = vmatpush.msra.mxu0 %v1431_v41  ;;  %395 = vmatpush.msra.mxu1 %v1433_v42 }
  0x61   :  { %415 = vmatpush.msra.mxu2 %v1437_v43  ;;  %435 = vmatpush.msra.mxu3 %v1439_v44 }
  0x62   :  { %376 = vmatpush.msra.mxu0 %v1443_v45  ;;  %396 = vmatpush.msra.mxu1 %v1445_v46 }
  0x63   :  { %416 = vmatpush.msra.mxu2 %v1449_v47  ;;  %436 = vmatpush.msra.mxu3 %v1451_v48 }
  0x64   :  { %377 = vmatpush.msra.mxu0 %v1458_v50  ;;  %397 = vmatpush.msra.mxu1 %v1462_v51 }
  0x65   :  { %417 = vmatpush.msra.mxu2 %v1464_v52  ;;  %437 = vmatpush.msra.mxu3 %v1468_v53 }
  0x66   :  { %378 = vmatpush.msra.mxu0 %v1470_v54  ;;  %398 = vmatpush.msra.mxu1 %v1473_v55 }
  0x67   :  { %418 = vmatpush.msra.mxu2 %v1475_v56  ;;  %438 = vmatpush.msra.mxu3 %v2350_v58  ;;  %v104_v58 = vld [vmem:[%s2217_s1] sm:$0xf] }
  0x68   :  { %379 = vmatpush.msra.mxu0 %v2351_v57  ;;  %399 = vmatpush.msra.mxu1 %v1485_v59  ;;  %v1647_v56 = vperm.slane %v104_v58, 0  ;;  %v1649_v57 = vperm.slane %v104_v58, 1  ;;  %v1660_v52 = vperm.slane %v104_v58, 2  ;;  %v1663_v50 = vperm.slane %v104_v58, 3 }
  0x69   :  { %419 = vmatpush.msra.mxu2 %v1487_v60  ;;  %439 = vmatpush.msra.mxu3 %v1491_v61  ;;  %v114_v61 = vld [vmem:[%s2218_s2] sm:$0xf] }
  0x6a   :  { %380 = vmatpush.msra.mxu0 %v1493_v62  ;;  %400 = vmatpush.msra.mxu1 %v1497_v63  ;;  %2352 = vst [vmem:[#allocation33_spill] sm:$0xff] %v1647_v56  ;;  %v1658_v60 = vperm.slane %v114_v61, 1  ;;  %v1666_v46 = vperm.slane %v114_v61, 2  ;;  %v1669_v44 = vperm.slane %v114_v61, 3 }
  0x6b   :  { %420 = vmatpush.msra.mxu2 %v1499_v0  ;;  %440 = vmatpush.msra.mxu3 %v1503_v49  ;;  %2353 = vst [vmem:[#allocation34_spill] sm:$0xff] %v1649_v57  ;;  %v1656_v0 = vperm.slane %v114_v61, 0 }
  0x6c   :  { %2355 = vst [vmem:[#allocation36_spill] sm:$0xff] %v1658_v60 }
  0x6d   :  { %2354 = vst [vmem:[#allocation35_spill] sm:$0xff] %v1656_v0 }
  0x6e   :  { %2356 = vst [vmem:[#allocation37_spill] sm:$0xff] %v1660_v52 }
  0x6f   :  { %2357 = vst [vmem:[#allocation38_spill] sm:$0xff] %v1663_v50 }
  0x92   :  { %v130_v59 = vpop.permute.xlu0 %129 }
  0x93   :  { %v132_v62 = vmul.f32 %v130_v59, %v1647_v56  ;;  %v133_v63 = vmul.f32 %v130_v59, %v1649_v57  ;;  %v134_v57 = vmul.f32 %v130_v59, %v1660_v52 }
  0xa6   :  { %v153_v49 = vpop.f32.mrf.mxu0  ;;  %v173_v54 = vpop.f32.mrf.mxu1 }
  0xa7   :  { %v154_v55 = vadd.f32 %v153_v49, %v132_v62  ;;  %v174_v53 = vadd.f32 %v173_v54, %v133_v63  ;;  %v135_v54 = vmul.f32 %v130_v59, %v1663_v50 }
  0xa9   :  { %v216_v51 = vadd.f32 %v154_v55, %v1656_v0  ;;  %v217_v48 = vadd.f32 %v174_v53, %v1658_v60 }
  0xab   :  { %v220_v47 = vmul.f32 0.5, %v216_v51  ;;  %v224_v56 = vmul.f32 0.5, %v217_v48 }
  0xad   :  { %1083 = vtanh.f32 %v220_v47  ;;  %v193_v45 = vpop.f32.mrf.mxu2  ;;  %v213_v63 = vpop.f32.mrf.mxu3 }
  0xae   :  { %1085 = vtanh.f32 %v224_v56  ;;  %v194_v62 = vadd.f32 %v193_v45, %v134_v57  ;;  %v214_v55 = vadd.f32 %v213_v63, %v135_v54 }
  0xb0   :  { %v218_v49 = vadd.f32 %v194_v62, %v1666_v46  ;;  %v219_v53 = vadd.f32 %v214_v55, %v1669_v44  ;;  %v2362_v55 = vld [vmem:[#allocation15_spill] sm:$0xff] }
  0xb2   :  { %1087 = vtanh.f32 %v218_v49  ;;  %v229_v51 = vmul.f32 0.5, %v219_v53  ;;  %v2363_v49 = vld [vmem:[#allocation16_spill] sm:$0xff]  ;;  %v2364_v53 = vld [vmem:[#allocation17_spill] sm:$0xff] }
  0xb3   :  { %v1084_v48 = vpop.eup %1083 }
  0xb4   :  { %v1086_v58 = vpop.eup %1085  ;;  %v222_v60 = vadd.f32 1.0, %v1084_v48  ;;  %1089 = vtanh.f32 %v229_v51  ;;  %v2365_v48 = vld [vmem:[#allocation18_spill] sm:$0xff]  ;;  %v2366_v51 = vld [vmem:[#allocation19_spill] sm:$0xff] }
  0xb5   :  { %v226_v52 = vadd.f32 1.0, %v1086_v58  ;;  %v2367_v58 = vld [vmem:[#allocation20_spill] sm:$0xff] }
  0xb6   :  { %v223_v47 = vmul.f32 0.5, %v222_v60  ;;  %v2360_v60 = vld [vmem:[#allocation13_spill] sm:$0xff] }
  0xb7   :  { %v227_v61 = vmul.f32 0.5, %v226_v52  ;;  %v2359_v52 = vld [vmem:[#allocation12_spill] sm:$0xff] }
  0xb8   :  { %v1088_v0 = vpop.eup %1087 }
  0xb9   :  { %v233_v43 = vmul.f32 0.0, %v227_v61  ;;  %v234_v59 = vmul.f32 %v1088_v0, %v223_v47  ;;  %v2361_v0 = vld [vmem:[#allocation14_spill] sm:$0xff]  ;;  %v2368_v47 = vld [vmem:[#allocation21_spill] sm:$0xff] }
  0xba   :  { %v1090_v56 = vpop.eup %1089  ;;  %v2369_v61 = vld [vmem:[#allocation22_spill] sm:$0xff] }
  0xbb   :  { %v1674_v45 = vadd.f32 %v234_v59, %v233_v43  ;;  %v231_v57 = vadd.f32 1.0, %v1090_v56  ;;  %v2358_v43 = vld [vmem:[#allocation11_spill] sm:$0xff]  ;;  %v2371_v56 = vld [vmem:[#allocation24_spill] sm:$0xff] }
  0xbc   :  { %v2370_v59 = vld [vmem:[#allocation23_spill] sm:$0xff] }
  0xbd   :  { %1091 = vtanh.f32 %v1674_v45  ;;  %v232_v54 = vmul.f32 0.5, %v231_v57  ;;  %v2372_v57 = vld [vmem:[#allocation25_spill] sm:$0xff] }
  0xc3   :  { %v1092_v62 = vpop.eup %1091 }
  0xc4   :  { %v237_v63 = vmul.f32 %v1092_v62, %v232_v54  ;;  %v2373_v54 = vld [vmem:[#allocation26_spill] sm:$0xff]  ;;  %v2374_v62 = vld [vmem:[#allocation27_spill] sm:$0xff] }
  0xc6   :  { %238 = vst [vmem:[#allocation7] sm:$0xff] %v237_v63  ;;  %266 = vmatmul.f32.vlgmr.msrb.gmra.mxu0 %v237_v63  ;;  %286 = vmatmul.f32.vlgmr.msrb.gmra.mxu1 %v237_v63 }
  0xc7   :  { %306 = vmatmul.f32.vlgmr.msrb.gmra.mxu2 %v237_v63  ;;  %326 = vmatmul.f32.vlgmr.msrb.gmra.mxu3 %v237_v63  ;;  %v2375_v63 = vld [vmem:[#allocation28_spill] sm:$0xff] }
  0xc8   :  { %480 = vmatpush.msrb.mxu0 %v1315_v1  ;;  %500 = vmatpush.msrb.mxu1 %v1317_v2 }
  0xc9   :  { %520 = vmatpush.msrb.mxu2 %v1319_v3  ;;  %540 = vmatpush.msrb.mxu3 %v1323_v4 }
  0xca   :  { %481 = vmatpush.msrb.mxu0 %v1325_v5  ;;  %501 = vmatpush.msrb.mxu1 %v1327_v6 }
  0xcb   :  { %521 = vmatpush.msrb.mxu2 %v1331_v7  ;;  %541 = vmatpush.msrb.mxu3 %v1333_v8 }
  0xcc   :  { %482 = vmatpush.msrb.mxu0 %v1335_v9  ;;  %502 = vmatpush.msrb.mxu1 %v1339_v10 }
  0xcd   :  { %522 = vmatpush.msrb.mxu2 %v1341_v11  ;;  %542 = vmatpush.msrb.mxu3 %v1343_v12 }
  0xce   :  { %483 = vmatpush.msrb.mxu0 %v1347_v13  ;;  %503 = vmatpush.msrb.mxu1 %v1349_v14 }
  0xcf   :  { %523 = vmatpush.msrb.mxu2 %v1353_v15  ;;  %543 = vmatpush.msrb.mxu3 %v1355_v16 }
  0xd0   :  { %484 = vmatpush.msrb.mxu0 %v1359_v17  ;;  %504 = vmatpush.msrb.mxu1 %v1361_v18 }
  0xd1   :  { %524 = vmatpush.msrb.mxu2 %v1365_v19  ;;  %544 = vmatpush.msrb.mxu3 %v1367_v20 }
  0xd2   :  { %485 = vmatpush.msrb.mxu0 %v1371_v21  ;;  %505 = vmatpush.msrb.mxu1 %v1373_v22 }
  0xd3   :  { %525 = vmatpush.msrb.mxu2 %v1377_v23  ;;  %545 = vmatpush.msrb.mxu3 %v1379_v24 }
  0xd4   :  { %486 = vmatpush.msrb.mxu0 %v1383_v25  ;;  %506 = vmatpush.msrb.mxu1 %v1385_v26 }
  0xd5   :  { %526 = vmatpush.msrb.mxu2 %v1389_v27  ;;  %546 = vmatpush.msrb.mxu3 %v1391_v28 }
  0xd6   :  { %487 = vmatpush.msrb.mxu0 %v1395_v29  ;;  %507 = vmatpush.msrb.mxu1 %v1397_v30 }
  0xd7   :  { %527 = vmatpush.msrb.mxu2 %v1401_v31  ;;  %547 = vmatpush.msrb.mxu3 %v1403_v32 }
  0xd8   :  { %488 = vmatpush.msrb.mxu0 %v1407_v33  ;;  %508 = vmatpush.msrb.mxu1 %v1409_v34 }
  0xd9   :  { %528 = vmatpush.msrb.mxu2 %v1413_v35  ;;  %548 = vmatpush.msrb.mxu3 %v1415_v36 }
  0xda   :  { %489 = vmatpush.msrb.mxu0 %v1419_v37  ;;  %509 = vmatpush.msrb.mxu1 %v1421_v38 }
  0xdb   :  { %529 = vmatpush.msrb.mxu2 %v1425_v39  ;;  %549 = vmatpush.msrb.mxu3 %v1427_v40 }
  0xdc   :  { %490 = vmatpush.msrb.mxu0 %v1431_v41  ;;  %510 = vmatpush.msrb.mxu1 %v1433_v42 }
  0xdd   :  { %530 = vmatpush.msrb.mxu2 %v2358_v43  ;;  %550 = vmatpush.msrb.mxu3 %v2359_v52  ;;  %v2384_v52 = vld [vmem:[#allocation37_spill] sm:$0xff] }
  0xde   :  { %491 = vmatpush.msrb.mxu0 %v2360_v60  ;;  %511 = vmatpush.msrb.mxu1 %v2361_v0 }
  0xdf   :  { %531 = vmatpush.msrb.mxu2 %v2362_v55  ;;  %551 = vmatpush.msrb.mxu3 %v2363_v49  ;;  %v2383_v55 = vld [vmem:[#allocation36_spill] sm:$0xff] }
  0xe0   :  { %492 = vmatpush.msrb.mxu0 %v2364_v53  ;;  %512 = vmatpush.msrb.mxu1 %v2365_v48  ;;  %v2376_v48 = vld [vmem:[#allocation29_spill] sm:$0xff] }
  0xe1   :  { %532 = vmatpush.msrb.mxu2 %v2366_v51  ;;  %552 = vmatpush.msrb.mxu3 %v2367_v58  ;;  %v2377_v51 = vld [vmem:[#allocation30_spill] sm:$0xff]  ;;  %v2378_v58 = vld [vmem:[#allocation31_spill] sm:$0xff] }
  0xe2   :  { %493 = vmatpush.msrb.mxu0 %v2368_v47  ;;  %513 = vmatpush.msrb.mxu1 %v2369_v61  ;;  %v2379_v47 = vld [vmem:[#allocation32_spill] sm:$0xff]  ;;  %v2381_v61 = vld [vmem:[#allocation34_spill] sm:$0xff] }
  0xe3   :  { %533 = vmatpush.msrb.mxu2 %v2370_v59  ;;  %553 = vmatpush.msrb.mxu3 %v2371_v56  ;;  %v1066_v56 = vld [vmem:[%s2216_s0 + $0x10] sm:$0xff]  ;;  %v2380_v59 = vld [vmem:[#allocation33_spill] sm:$0xff] }
  0xe4   :  { %494 = vmatpush.msrb.mxu0 %v2372_v57  ;;  %514 = vmatpush.msrb.mxu1 %v2373_v54  ;;  %v244_v57 = vpop.permute.xlu0 %243 }
  0xe5   :  { %534 = vmatpush.msrb.mxu2 %v2374_v62  ;;  %554 = vmatpush.msrb.mxu3 %v2375_v63  ;;  %v246_v54 = vmul.f32 %v244_v57, %v2380_v59  ;;  %v247_v62 = vmul.f32 %v244_v57, %v2381_v61  ;;  %v248_v43 = vmul.f32 %v244_v57, %v2384_v52 }
  0xe6   :  { %495 = vmatpush.msrb.mxu0 %v2376_v48  ;;  %515 = vmatpush.msrb.mxu1 %v2377_v51  ;;  %v249_v59 = vmul.f32 %v244_v57, %v1663_v50 }
  0xe7   :  { %535 = vmatpush.msrb.mxu2 %v2378_v58  ;;  %555 = vmatpush.msrb.mxu3 %v2379_v47  ;;  %v1067_v58 = vld [vmem:[%s2216_s0 + $0x18] sm:$0xff]  ;;  %v2382_v47 = vld [vmem:[#allocation35_spill] sm:$0xff] }
  0xe8   :  { %358 = vperm.xlu1 %1081, %v1066_v56  }
  0xf0   :  { %473 = vperm.xlu1 %1081, %v1067_v58  }
 0x143   :  { %v267_v53 = vpop.f32.mrf.mxu0  ;;  %v287_v63 = vpop.f32.mrf.mxu1 }
 0x144   :  { %v268_v49 = vadd.f32 %v267_v53, %v246_v54  ;;  %v288_v48 = vadd.f32 %v287_v63, %v247_v62  ;;  %v1071_v53 = vld [vmem:[%s2216_s0 + $0x38] sm:$0xff] }
 0x145   :  { %933 = vperm.xlu1 %1081, %v1071_v53  }
 0x146   :  { %v330_v51 = vadd.f32 %v268_v49, %v2382_v47  ;;  %v331_v0 = vadd.f32 %v288_v48, %v2383_v55 }
 0x148   :  { %v334_v60 = vmul.f32 0.5, %v330_v51  ;;  %v338_v56 = vmul.f32 0.5, %v331_v0 }
 0x14a   :  { %1093 = vtanh.f32 %v334_v60  ;;  %v307_v61 = vpop.f32.mrf.mxu2  ;;  %v327_v42 = vpop.f32.mrf.mxu3 }
 0x14b   :  { %1095 = vtanh.f32 %v338_v56  ;;  %v308_v54 = vadd.f32 %v307_v61, %v248_v43  ;;  %v328_v58 = vadd.f32 %v327_v42, %v249_v59 }
 0x14d   :  { %v332_v49 = vadd.f32 %v308_v54, %v1666_v46  ;;  %v333_v48 = vadd.f32 %v328_v58, %v1669_v44 }
 0x14f   :  { %1097 = vtanh.f32 %v332_v49  ;;  %v343_v0 = vmul.f32 0.5, %v333_v48 }
 0x150   :  { %v1094_v51 = vpop.eup %1093 }
 0x151   :  { %v1096_v62 = vpop.eup %1095  ;;  %v336_v57 = vadd.f32 1.0, %v1094_v51  ;;  %1099 = vtanh.f32 %v343_v0 }
 0x152   :  { %v340_v60 = vadd.f32 1.0, %v1096_v62 }
 0x153   :  { %v337_v63 = vmul.f32 0.5, %v336_v57 }
 0x154   :  { %v341_v50 = vmul.f32 0.5, %v340_v60 }
 0x155   :  { %v1098_v52 = vpop.eup %1097 }
 0x156   :  { %v347_v55 = vmul.f32 %v341_v50, %v1674_v45  ;;  %v348_v56 = vmul.f32 %v1098_v52, %v337_v63 }
 0x157   :  { %v1100_v43 = vpop.eup %1099 }
 0x158   :  { %v1759_v42 = vadd.f32 %v348_v56, %v347_v55  ;;  %v345_v61 = vadd.f32 1.0, %v1100_v43 }
 0x15a   :  { %1101 = vtanh.f32 %v1759_v42  ;;  %v346_v59 = vmul.f32 0.5, %v345_v61 }
 0x160   :  { %v1102_v53 = vpop.eup %1101 }
 0x161   :  { %v351_v54 = vmul.f32 %v1102_v53, %v346_v59 }
 0x163   :  { %353 = vst [vmem:[#allocation7 + $0x8] sm:$0xff] %v351_v54  ;;  %381 = vmatmul.f32.vlgmr.msra.gmra.mxu0 %v351_v54  ;;  %401 = vmatmul.f32.vlgmr.msra.gmra.mxu1 %v351_v54 }
 0x164   :  { %421 = vmatmul.f32.vlgmr.msra.gmra.mxu2 %v351_v54  ;;  %441 = vmatmul.f32.vlgmr.msra.gmra.mxu3 %v351_v54 }
 0x165   :  { %595 = vmatpush.msra.mxu0 %v1315_v1  ;;  %615 = vmatpush.msra.mxu1 %v1317_v2  ;;  %v2385_v1 = vld [vmem:[#allocation10_spill] sm:$0xff]  ;;  %v2386_v2 = vld [vmem:[#allocation11_spill] sm:$0xff] }
 0x166   :  { %635 = vmatpush.msra.mxu2 %v1319_v3  ;;  %655 = vmatpush.msra.mxu3 %v1323_v4  ;;  %v2387_v3 = vld [vmem:[#allocation12_spill] sm:$0xff]  ;;  %v2388_v4 = vld [vmem:[#allocation13_spill] sm:$0xff] }
 0x167   :  { %596 = vmatpush.msra.mxu0 %v1325_v5  ;;  %616 = vmatpush.msra.mxu1 %v1327_v6  ;;  %v2389_v5 = vld [vmem:[#allocation14_spill] sm:$0xff]  ;;  %v2390_v6 = vld [vmem:[#allocation15_spill] sm:$0xff] }
 0x168   :  { %636 = vmatpush.msra.mxu2 %v1331_v7  ;;  %656 = vmatpush.msra.mxu3 %v1333_v8  ;;  %v2391_v7 = vld [vmem:[#allocation16_spill] sm:$0xff]  ;;  %v2392_v8 = vld [vmem:[#allocation17_spill] sm:$0xff] }
 0x169   :  { %597 = vmatpush.msra.mxu0 %v1335_v9  ;;  %617 = vmatpush.msra.mxu1 %v1339_v10  ;;  %v2393_v9 = vld [vmem:[#allocation18_spill] sm:$0xff]  ;;  %v2394_v10 = vld [vmem:[#allocation19_spill] sm:$0xff] }
 0x16a   :  { %637 = vmatpush.msra.mxu2 %v1341_v11  ;;  %657 = vmatpush.msra.mxu3 %v1343_v12  ;;  %v2395_v11 = vld [vmem:[#allocation20_spill] sm:$0xff]  ;;  %v2396_v12 = vld [vmem:[#allocation21_spill] sm:$0xff] }
 0x16b   :  { %598 = vmatpush.msra.mxu0 %v1347_v13  ;;  %618 = vmatpush.msra.mxu1 %v1349_v14  ;;  %v2397_v13 = vld [vmem:[#allocation22_spill] sm:$0xff]  ;;  %v2398_v14 = vld [vmem:[#allocation23_spill] sm:$0xff] }
 0x16c   :  { %638 = vmatpush.msra.mxu2 %v1353_v15  ;;  %658 = vmatpush.msra.mxu3 %v1355_v16  ;;  %v2399_v15 = vld [vmem:[#allocation24_spill] sm:$0xff]  ;;  %v2400_v16 = vld [vmem:[#allocation25_spill] sm:$0xff] }
 0x16d   :  { %599 = vmatpush.msra.mxu0 %v1359_v17  ;;  %619 = vmatpush.msra.mxu1 %v1361_v18  ;;  %v2401_v17 = vld [vmem:[#allocation26_spill] sm:$0xff]  ;;  %v2402_v18 = vld [vmem:[#allocation27_spill] sm:$0xff] }
 0x16e   :  { %639 = vmatpush.msra.mxu2 %v1365_v19  ;;  %659 = vmatpush.msra.mxu3 %v1367_v20  ;;  %v2403_v19 = vld [vmem:[#allocation28_spill] sm:$0xff]  ;;  %v2404_v20 = vld [vmem:[#allocation29_spill] sm:$0xff] }
 0x16f   :  { %600 = vmatpush.msra.mxu0 %v1371_v21  ;;  %620 = vmatpush.msra.mxu1 %v1373_v22  ;;  %v2405_v21 = vld [vmem:[#allocation30_spill] sm:$0xff]  ;;  %v2406_v22 = vld [vmem:[#allocation31_spill] sm:$0xff] }
 0x170   :  { %640 = vmatpush.msra.mxu2 %v1377_v23  ;;  %660 = vmatpush.msra.mxu3 %v1379_v24  ;;  %v2407_v23 = vld [vmem:[#allocation32_spill] sm:$0xff]  ;;  %v359_v24 = vpop.permute.xlu1 %358 }
 0x171   :  { %601 = vmatpush.msra.mxu0 %v1383_v25  ;;  %621 = vmatpush.msra.mxu1 %v1385_v26  ;;  %v2408_v25 = vld [vmem:[#allocation33_spill] sm:$0xff] }
 0x172   :  { %641 = vmatpush.msra.mxu2 %v1389_v27  ;;  %661 = vmatpush.msra.mxu3 %v1391_v28  ;;  %v361_v26 = vmul.f32 %v359_v24, %v2408_v25  ;;  %v2409_v27 = vld [vmem:[#allocation34_spill] sm:$0xff] }
 0x173   :  { %602 = vmatpush.msra.mxu0 %v1395_v29  ;;  %622 = vmatpush.msra.mxu1 %v1397_v30  ;;  %v362_v28 = vmul.f32 %v359_v24, %v2409_v27 }
 0x174   :  { %642 = vmatpush.msra.mxu2 %v1401_v31  ;;  %662 = vmatpush.msra.mxu3 %v1403_v32 }
 0x175   :  { %603 = vmatpush.msra.mxu0 %v1407_v33  ;;  %623 = vmatpush.msra.mxu1 %v1409_v34  ;;  %v2410_v34 = vld [vmem:[#allocation36_spill] sm:$0xff] }
 0x176   :  { %643 = vmatpush.msra.mxu2 %v1413_v35  ;;  %663 = vmatpush.msra.mxu3 %v1415_v36 }
 0x177   :  { %604 = vmatpush.msra.mxu0 %v1419_v37  ;;  %624 = vmatpush.msra.mxu1 %v1421_v38  ;;  %v2411_v38 = vld [vmem:[#allocation37_spill] sm:$0xff] }
 0x178   :  { %644 = vmatpush.msra.mxu2 %v1425_v39  ;;  %664 = vmatpush.msra.mxu3 %v1427_v40  ;;  %v363_v39 = vmul.f32 %v359_v24, %v2411_v38  ;;  %v2412_v40 = vld [vmem:[#allocation38_spill] sm:$0xff] }
 0x179   :  { %605 = vmatpush.msra.mxu0 %v1431_v41  ;;  %625 = vmatpush.msra.mxu1 %v2385_v1  ;;  %v364_v50 = vmul.f32 %v359_v24, %v2412_v40 }
 0x17a   :  { %645 = vmatpush.msra.mxu2 %v2386_v2  ;;  %665 = vmatpush.msra.mxu3 %v2387_v3 }
 0x17b   :  { %606 = vmatpush.msra.mxu0 %v2388_v4  ;;  %626 = vmatpush.msra.mxu1 %v2389_v5 }
 0x17c   :  { %646 = vmatpush.msra.mxu2 %v2390_v6  ;;  %666 = vmatpush.msra.mxu3 %v2391_v7 }
 0x17d   :  { %607 = vmatpush.msra.mxu0 %v2392_v8  ;;  %627 = vmatpush.msra.mxu1 %v2393_v9 }
 0x17e   :  { %647 = vmatpush.msra.mxu2 %v2394_v10  ;;  %667 = vmatpush.msra.mxu3 %v2395_v11 }
 0x17f   :  { %608 = vmatpush.msra.mxu0 %v2396_v12  ;;  %628 = vmatpush.msra.mxu1 %v2397_v13 }
 0x180   :  { %648 = vmatpush.msra.mxu2 %v2398_v14  ;;  %668 = vmatpush.msra.mxu3 %v2399_v15 }
 0x181   :  { %609 = vmatpush.msra.mxu0 %v2400_v16  ;;  %629 = vmatpush.msra.mxu1 %v2401_v17 }
 0x182   :  { %649 = vmatpush.msra.mxu2 %v2402_v18  ;;  %669 = vmatpush.msra.mxu3 %v2403_v19 }
 0x183   :  { %610 = vmatpush.msra.mxu0 %v2404_v20  ;;  %630 = vmatpush.msra.mxu1 %v2405_v21 }
 0x184   :  { %650 = vmatpush.msra.mxu2 %v2406_v22  ;;  %670 = vmatpush.msra.mxu3 %v2407_v23 }
 0x1e0   :  { %v382_v29 = vpop.f32.mrf.mxu0  ;;  %v402_v30 = vpop.f32.mrf.mxu1 }
 0x1e1   :  { %v383_v31 = vadd.f32 %v382_v29, %v361_v26  ;;  %v403_v32 = vadd.f32 %v402_v30, %v362_v28  ;;  %v1838_v30 = vld [vmem:[#allocation4 + $0x1e0] sm:$0xff] }
 0x1e3   :  { %v445_v33 = vadd.f32 %v383_v31, %v2382_v47  ;;  %v446_v35 = vadd.f32 %v403_v32, %v2410_v34  ;;  %v1844_v31 = vld [vmem:[#allocation4 + $0x1f0] sm:$0xff]  ;;  %v1847_v32 = vld [vmem:[#allocation4 + $0x1f8] sm:$0xff] }
 0x1e5   :  { %v449_v36 = vmul.f32 0.5, %v445_v33  ;;  %v453_v37 = vmul.f32 0.5, %v446_v35  ;;  %v1850_v33 = vld [vmem:[#allocation4 + $0x1c0] sm:$0xff]  ;;  %v1853_v35 = vld [vmem:[#allocation4 + $0x1c8] sm:$0xff] }
 0x1e7   :  { %1103 = vtanh.f32 %v449_v36  ;;  %v422_v45 = vpop.f32.mrf.mxu2  ;;  %v442_v52 = vpop.f32.mrf.mxu3  ;;  %v1856_v36 = vld [vmem:[#allocation4 + $0x1d0] sm:$0xff] }
 0x1e8   :  { %1105 = vtanh.f32 %v453_v37  ;;  %v423_v55 = vadd.f32 %v422_v45, %v363_v39  ;;  %v443_v58 = vadd.f32 %v442_v52, %v364_v50  ;;  %v1859_v37 = vld [vmem:[#allocation4 + $0x1d8] sm:$0xff]  ;;  %v1862_v39 = vld [vmem:[#allocation4 + $0x1a0] sm:$0xff]  ;;  %v1865_v50 = vld [vmem:[#allocation4 + $0x1a8] sm:$0xff] }
 0x1e9   :  { %v1868_v45 = vld [vmem:[#allocation4 + $0x1b0] sm:$0xff]  ;;  %v1871_v52 = vld [vmem:[#allocation4 + $0x1b8] sm:$0xff] }
 0x1ea   :  { %v447_v49 = vadd.f32 %v423_v55, %v1666_v46  ;;  %v448_v48 = vadd.f32 %v443_v58, %v1669_v44  ;;  %v1874_v55 = vld [vmem:[#allocation4 + $0x180] sm:$0xff]  ;;  %v1877_v58 = vld [vmem:[#allocation4 + $0x188] sm:$0xff] }
 0x1ec   :  { %1107 = vtanh.f32 %v447_v49  ;;  %v458_v0 = vmul.f32 0.5, %v448_v48  ;;  %v1880_v49 = vld [vmem:[#allocation4 + $0x190] sm:$0xff]  ;;  %v1883_v48 = vld [vmem:[#allocation4 + $0x198] sm:$0xff] }
 0x1ed   :  { %v1104_v51 = vpop.eup %1103 }
 0x1ee   :  { %v1106_v62 = vpop.eup %1105  ;;  %v451_v57 = vadd.f32 1.0, %v1104_v51  ;;  %1109 = vtanh.f32 %v458_v0  ;;  %v1886_v0 = vld [vmem:[#allocation4 + $0x160] sm:$0xff]  ;;  %v1889_v51 = vld [vmem:[#allocation4 + $0x168] sm:$0xff] }
 0x1ef   :  { %v455_v60 = vadd.f32 1.0, %v1106_v62  ;;  %v1892_v62 = vld [vmem:[#allocation4 + $0x170] sm:$0xff] }
 0x1f0   :  { %v452_v63 = vmul.f32 0.5, %v451_v57  ;;  %v1895_v57 = vld [vmem:[#allocation4 + $0x178] sm:$0xff] }
 0x1f1   :  { %v456_v56 = vmul.f32 0.5, %v455_v60  ;;  %v1898_v60 = vld [vmem:[#allocation4 + $0x140] sm:$0xff] }
 0x1f2   :  { %v1108_v43 = vpop.eup %1107 }
 0x1f3   :  { %v462_v61 = vmul.f32 %v456_v56, %v1759_v42  ;;  %v463_v59 = vmul.f32 %v1108_v43, %v452_v63  ;;  %v1841_v42 = vld [vmem:[#allocation4 + $0x1e8] sm:$0xff]  ;;  %v1904_v56 = vld [vmem:[#allocation4 + $0x150] sm:$0xff]  ;;  %v1907_v43 = vld [vmem:[#allocation4 + $0x158] sm:$0xff] }
 0x1f4   :  { %v1110_v53 = vpop.eup %1109  ;;  %v1901_v63 = vld [vmem:[#allocation4 + $0x148] sm:$0xff] }
 0x1f5   :  { %v1835_v54 = vadd.f32 %v463_v59, %v462_v61  ;;  %v460_v24 = vadd.f32 1.0, %v1110_v53  ;;  %v1910_v61 = vld [vmem:[#allocation4 + $0x120] sm:$0xff]  ;;  %v1913_v59 = vld [vmem:[#allocation4 + $0x128] sm:$0xff]  ;;  %v1916_v53 = vld [vmem:[#allocation4 + $0x130] sm:$0xff] }
 0x1f6   :  { %2413 = vst [vmem:[#allocation35_spill] sm:$0xff] %v1913_v59 }
 0x1f7   :  { %1111 = vtanh.f32 %v1835_v54  ;;  %v461_v26 = vmul.f32 0.5, %v460_v24  ;;  %2414 = vst [vmem:[#allocation10_spill] sm:$0xff] %v1916_v53  ;;  %v1919_v24 = vld [vmem:[#allocation4 + $0x138] sm:$0xff] }
 0x1f8   :  { %2415 = vst [vmem:[#allocation11_spill] sm:$0xff] %v1919_v24 }
 0x1fd   :  { %v1112_v28 = vpop.eup %1111 }
 0x1fe   :  { %v466_v29 = vmul.f32 %v1112_v28, %v461_v26  ;;  %v1922_v26 = vld [vmem:[#allocation4 + $0x100] sm:$0xff]  ;;  %v1925_v28 = vld [vmem:[#allocation4 + $0x108] sm:$0xff] }
 0x1ff   :  { %2416 = vst [vmem:[#allocation12_spill] sm:$0xff] %v1922_v26 }
 0x200   :  { %468 = vst [vmem:[#allocation7 + $0x10] sm:$0xff] %v466_v29  ;;  %496 = vmatmul.f32.vlgmr.msrb.gmra.mxu0 %v466_v29  ;;  %516 = vmatmul.f32.vlgmr.msrb.gmra.mxu1 %v466_v29 }
 0x201   :  { %536 = vmatmul.f32.vlgmr.msrb.gmra.mxu2 %v466_v29  ;;  %556 = vmatmul.f32.vlgmr.msrb.gmra.mxu3 %v466_v29  ;;  %2417 = vst [vmem:[#allocation13_spill] sm:$0xff] %v1925_v28  ;;  %v1928_v29 = vld [vmem:[#allocation4 + $0x110] sm:$0xff] }
 0x202   :  { %710 = vmatpush.msrb.mxu0 %v1838_v30  ;;  %730 = vmatpush.msrb.mxu1 %v1841_v42  ;;  %2418 = vst [vmem:[#allocation14_spill] sm:$0xff] %v1928_v29 }
 0x203   :  { %750 = vmatpush.msrb.mxu2 %v1844_v31  ;;  %770 = vmatpush.msrb.mxu3 %v1847_v32 }
 0x204   :  { %711 = vmatpush.msrb.mxu0 %v1850_v33  ;;  %731 = vmatpush.msrb.mxu1 %v1853_v35 }
 0x205   :  { %751 = vmatpush.msrb.mxu2 %v1856_v36  ;;  %771 = vmatpush.msrb.mxu3 %v1859_v37 }
 0x206   :  { %712 = vmatpush.msrb.mxu0 %v1862_v39  ;;  %732 = vmatpush.msrb.mxu1 %v1865_v50 }
 0x207   :  { %752 = vmatpush.msrb.mxu2 %v1868_v45  ;;  %772 = vmatpush.msrb.mxu3 %v1871_v52 }
 0x208   :  { %713 = vmatpush.msrb.mxu0 %v1874_v55  ;;  %733 = vmatpush.msrb.mxu1 %v1877_v58 }
 0x209   :  { %753 = vmatpush.msrb.mxu2 %v1880_v49  ;;  %773 = vmatpush.msrb.mxu3 %v1883_v48 }
 0x20a   :  { %714 = vmatpush.msrb.mxu0 %v1886_v0  ;;  %734 = vmatpush.msrb.mxu1 %v1889_v51 }
 0x20b   :  { %754 = vmatpush.msrb.mxu2 %v1892_v62  ;;  %774 = vmatpush.msrb.mxu3 %v1895_v57 }
 0x20c   :  { %715 = vmatpush.msrb.mxu0 %v1898_v60  ;;  %735 = vmatpush.msrb.mxu1 %v1901_v63 }
 0x20d   :  { %755 = vmatpush.msrb.mxu2 %v1904_v56  ;;  %775 = vmatpush.msrb.mxu3 %v1907_v43 }
 0x20e   :  { %716 = vmatpush.msrb.mxu0 %v1910_v61  ;;  %736 = vmatpush.msrb.mxu1 %v1913_v59  ;;  %v1931_v59 = vld [vmem:[#allocation4 + $0x118] sm:$0xff] }
 0x20f   :  { %756 = vmatpush.msrb.mxu2 %v1916_v53  ;;  %776 = vmatpush.msrb.mxu3 %v1919_v24  ;;  %2419 = vst [vmem:[#allocation15_spill] sm:$0xff] %v1931_v59  ;;  %v1934_v53 = vld [vmem:[#allocation4 + $0xe0] sm:$0xff]  ;;  %v1937_v24 = vld [vmem:[#allocation4 + $0xe8] sm:$0xff] }
 0x210   :  { %717 = vmatpush.msrb.mxu0 %v1922_v26  ;;  %737 = vmatpush.msrb.mxu1 %v1925_v28  ;;  %2420 = vst [vmem:[#allocation16_spill] sm:$0xff] %v1934_v53  ;;  %v1940_v26 = vld [vmem:[#allocation4 + $0xf0] sm:$0xff]  ;;  %v1943_v28 = vld [vmem:[#allocation4 + $0xf8] sm:$0xff] }
 0x211   :  { %757 = vmatpush.msrb.mxu2 %v1928_v29  ;;  %777 = vmatpush.msrb.mxu3 %v1931_v59  ;;  %2421 = vst [vmem:[#allocation17_spill] sm:$0xff] %v1937_v24  ;;  %v1946_v29 = vld [vmem:[#allocation4 + $0xc0] sm:$0xff]  ;;  %v1949_v59 = vld [vmem:[#allocation4 + $0xc8] sm:$0xff] }
 0x212   :  { %718 = vmatpush.msrb.mxu0 %v1934_v53  ;;  %738 = vmatpush.msrb.mxu1 %v1937_v24  ;;  %v1952_v53 = vld [vmem:[#allocation4 + $0xd0] sm:$0xff]  ;;  %v1955_v24 = vld [vmem:[#allocation4 + $0xd8] sm:$0xff] }
 0x213   :  { %758 = vmatpush.msrb.mxu2 %v1940_v26  ;;  %778 = vmatpush.msrb.mxu3 %v1943_v28  ;;  %2422 = vst [vmem:[#allocation18_spill] sm:$0xff] %v1955_v24 }
 0x214   :  { %719 = vmatpush.msrb.mxu0 %v1946_v29  ;;  %739 = vmatpush.msrb.mxu1 %v1949_v59 }
 0x215   :  { %759 = vmatpush.msrb.mxu2 %v1952_v53  ;;  %779 = vmatpush.msrb.mxu3 %v1955_v24 }
 0x216   :  { %720 = vmatpush.msrb.mxu0 %v1431_v41  ;;  %740 = vmatpush.msrb.mxu1 %v2385_v1  ;;  %v474_v41 = vpop.permute.xlu1 %473 }
 0x217   :  { %760 = vmatpush.msrb.mxu2 %v2386_v2  ;;  %780 = vmatpush.msrb.mxu3 %v2387_v3  ;;  %v476_v1 = vmul.f32 %v474_v41, %v2408_v25  ;;  %v477_v2 = vmul.f32 %v474_v41, %v2409_v27 }
 0x218   :  { %721 = vmatpush.msrb.mxu0 %v2388_v4  ;;  %741 = vmatpush.msrb.mxu1 %v2389_v5 }
 0x219   :  { %761 = vmatpush.msrb.mxu2 %v2390_v6  ;;  %781 = vmatpush.msrb.mxu3 %v2391_v7  ;;  %v1068_v7 = vld [vmem:[%s2216_s0 + $0x20] sm:$0xff] }
 0x21a   :  { %722 = vmatpush.msrb.mxu0 %v2392_v8  ;;  %742 = vmatpush.msrb.mxu1 %v2393_v9 }
 0x21b   :  { %762 = vmatpush.msrb.mxu2 %v2394_v10  ;;  %782 = vmatpush.msrb.mxu3 %v2395_v11 }
 0x21c   :  { %723 = vmatpush.msrb.mxu0 %v2396_v12  ;;  %743 = vmatpush.msrb.mxu1 %v2397_v13  ;;  %v478_v12 = vmul.f32 %v474_v41, %v2411_v38  ;;  %v479_v13 = vmul.f32 %v474_v41, %v2412_v40 }
 0x21d   :  { %763 = vmatpush.msrb.mxu2 %v2398_v14  ;;  %783 = vmatpush.msrb.mxu3 %v2399_v15 }
 0x21e   :  { %724 = vmatpush.msrb.mxu0 %v2400_v16  ;;  %744 = vmatpush.msrb.mxu1 %v2401_v17  ;;  %v1069_v16 = vld [vmem:[%s2216_s0 + $0x28] sm:$0xff]  ;;  %s1284_s0 = smov [#allocation7]  }
 0x21f   :  { %764 = vmatpush.msrb.mxu2 %v2402_v18  ;;  %784 = vmatpush.msrb.mxu3 %v2403_v19  ;;  %s1050_s13 = sshll.u32 %s1284_s0, 4  ;;  %s1051_s13 = int_to_ptr.vmem [resolvable:$true] %s1050_s13 }
 0x220   :  { %725 = vmatpush.msrb.mxu0 %v2404_v20  ;;  %745 = vmatpush.msrb.mxu1 %v2405_v21 }
 0x221   :  { %765 = vmatpush.msrb.mxu2 %v2406_v22  ;;  %785 = vmatpush.msrb.mxu3 %v2407_v23 }
 0x222   :  { %588 = vperm.xlu2 %1082, %v1068_v7  }
 0x22a   :  { %703 = vperm.xlu2 %1082, %v1069_v16   ;;  %v2427_v16 = vld [vmem:[#allocation13_spill] sm:$0xff] }
 0x27d   :  { %v497_v3 = vpop.f32.mrf.mxu0  ;;  %v517_v4 = vpop.f32.mrf.mxu1 }
 0x27e   :  { %v498_v5 = vadd.f32 %v497_v3, %v476_v1  ;;  %v518_v6 = vadd.f32 %v517_v4, %v477_v2 }
 0x280   :  { %v560_v8 = vadd.f32 %v498_v5, %v2382_v47  ;;  %v561_v9 = vadd.f32 %v518_v6, %v2410_v34 }
 0x282   :  { %v564_v10 = vmul.f32 0.5, %v560_v8  ;;  %v568_v11 = vmul.f32 0.5, %v561_v9 }
 0x284   :  { %1113 = vtanh.f32 %v564_v10  ;;  %v537_v14 = vpop.f32.mrf.mxu2  ;;  %v557_v15 = vpop.f32.mrf.mxu3 }
 0x285   :  { %1115 = vtanh.f32 %v568_v11  ;;  %v538_v17 = vadd.f32 %v537_v14, %v478_v12  ;;  %v558_v18 = vadd.f32 %v557_v15, %v479_v13  ;;  %v2424_v13 = vld [vmem:[#allocation10_spill] sm:$0xff]  ;;  %v2425_v14 = vld [vmem:[#allocation11_spill] sm:$0xff]  ;;  %v2426_v15 = vld [vmem:[#allocation12_spill] sm:$0xff] }
 0x287   :  { %v562_v19 = vadd.f32 %v538_v17, %v1666_v46  ;;  %v563_v20 = vadd.f32 %v558_v18, %v1669_v44  ;;  %v2428_v17 = vld [vmem:[#allocation14_spill] sm:$0xff]  ;;  %v2429_v18 = vld [vmem:[#allocation15_spill] sm:$0xff] }
 0x289   :  { %1117 = vtanh.f32 %v562_v19  ;;  %v573_v21 = vmul.f32 0.5, %v563_v20  ;;  %v2430_v19 = vld [vmem:[#allocation16_spill] sm:$0xff]  ;;  %v2431_v20 = vld [vmem:[#allocation17_spill] sm:$0xff] }
 0x28a   :  { %v1114_v22 = vpop.eup %1113 }
 0x28b   :  { %v1116_v23 = vpop.eup %1115  ;;  %v566_v41 = vadd.f32 1.0, %v1114_v22  ;;  %1119 = vtanh.f32 %v573_v21  ;;  %v2040_v21 = vld [vmem:[#allocation4 + $0xa0] sm:$0xff]  ;;  %v2043_v22 = vld [vmem:[#allocation4 + $0xa8] sm:$0xff] }
 0x28c   :  { %v570_v1 = vadd.f32 1.0, %v1116_v23  ;;  %2432 = vst [vmem:[#allocation19_spill] sm:$0xff] %v2040_v21  ;;  %v2046_v23 = vld [vmem:[#allocation4 + $0xb0] sm:$0xff] }
 0x28d   :  { %v567_v2 = vmul.f32 0.5, %v566_v41  ;;  %2433 = vst [vmem:[#allocation20_spill] sm:$0xff] %v2043_v22  ;;  %v2049_v41 = vld [vmem:[#allocation4 + $0xb8] sm:$0xff] }
 0x28e   :  { %v571_v3 = vmul.f32 0.5, %v570_v1  ;;  %2434 = vst [vmem:[#allocation21_spill] sm:$0xff] %v2046_v23  ;;  %v2052_v1 = vld [vmem:[#allocation4 + $0x80] sm:$0xff] }
 0x28f   :  { %v1118_v4 = vpop.eup %1117  ;;  %2435 = vst [vmem:[#allocation22_spill] sm:$0xff] %v2049_v41 }
 0x290   :  { %v577_v5 = vmul.f32 %v571_v3, %v1835_v54  ;;  %v578_v6 = vmul.f32 %v1118_v4, %v567_v2  ;;  %v2423_v54 = vld [vmem:[#allocation35_spill] sm:$0xff]  ;;  %2436 = vst [vmem:[#allocation23_spill] sm:$0xff] %v2052_v1  ;;  %v2058_v3 = vld [vmem:[#allocation4 + $0x90] sm:$0xff]  ;;  %v2061_v4 = vld [vmem:[#allocation4 + $0x98] sm:$0xff] }
 0x291   :  { %v1120_v7 = vpop.eup %1119  ;;  %v2055_v2 = vld [vmem:[#allocation4 + $0x88] sm:$0xff]  ;;  %2438 = vst [vmem:[#allocation25_spill] sm:$0xff] %v2058_v3 }
 0x292   :  { %v1997_v8 = vadd.f32 %v578_v6, %v577_v5  ;;  %v575_v9 = vadd.f32 1.0, %v1120_v7  ;;  %2437 = vst [vmem:[#allocation24_spill] sm:$0xff] %v2055_v2  ;;  %v2064_v5 = vld [vmem:[#allocation4 + $0x60] sm:$0xff]  ;;  %v2067_v6 = vld [vmem:[#allocation4 + $0x68] sm:$0xff]  ;;  %v2070_v7 = vld [vmem:[#allocation4 + $0x70] sm:$0xff] }
 0x293   :  { %2439 = vst [vmem:[#allocation26_spill] sm:$0xff] %v2061_v4 }
 0x294   :  { %1121 = vtanh.f32 %v1997_v8  ;;  %v576_v10 = vmul.f32 0.5, %v575_v9  ;;  %2440 = vst [vmem:[#allocation27_spill] sm:$0xff] %v2064_v5  ;;  %v2073_v9 = vld [vmem:[#allocation4 + $0x78] sm:$0xff] }
 0x295   :  { %2441 = vst [vmem:[#allocation28_spill] sm:$0xff] %v2067_v6 }
 0x296   :  { %2442 = vst [vmem:[#allocation29_spill] sm:$0xff] %v2070_v7 }
 0x297   :  { %2443 = vst [vmem:[#allocation30_spill] sm:$0xff] %v2073_v9 }
 0x29a   :  { %v1122_v11 = vpop.eup %1121 }
 0x29b   :  { %v581_v12 = vmul.f32 %v1122_v11, %v576_v10  ;;  %v2076_v10 = vld [vmem:[#allocation4 + $0x40] sm:$0xff]  ;;  %v2079_v11 = vld [vmem:[#allocation4 + $0x48] sm:$0xff] }
 0x29c   :  { %2444 = vst [vmem:[#allocation31_spill] sm:$0xff] %v2076_v10 }
 0x29d   :  { %583 = vst [vmem:[#allocation7 + $0x18] sm:$0xff] %v581_v12  ;;  %611 = vmatmul.f32.vlgmr.msra.gmra.mxu0 %v581_v12  ;;  %631 = vmatmul.f32.vlgmr.msra.gmra.mxu1 %v581_v12 }
 0x29e   :  { %651 = vmatmul.f32.vlgmr.msra.gmra.mxu2 %v581_v12  ;;  %671 = vmatmul.f32.vlgmr.msra.gmra.mxu3 %v581_v12  ;;  %2445 = vst [vmem:[#allocation32_spill] sm:$0xff] %v2079_v11  ;;  %v2082_v12 = vld [vmem:[#allocation4 + $0x50] sm:$0xff] }
 0x29f   :  { %825 = vmatpush.msra.mxu0 %v1838_v30  ;;  %845 = vmatpush.msra.mxu1 %v1841_v42  ;;  %2446 = vst [vmem:[#allocation36_spill] sm:$0xff] %v2082_v12 }
 0x2a0   :  { %865 = vmatpush.msra.mxu2 %v1844_v31  ;;  %885 = vmatpush.msra.mxu3 %v1847_v32 }
 0x2a1   :  { %826 = vmatpush.msra.mxu0 %v1850_v33  ;;  %846 = vmatpush.msra.mxu1 %v1853_v35 }
 0x2a2   :  { %866 = vmatpush.msra.mxu2 %v1856_v36  ;;  %886 = vmatpush.msra.mxu3 %v1859_v37 }
 0x2a3   :  { %827 = vmatpush.msra.mxu0 %v1862_v39  ;;  %847 = vmatpush.msra.mxu1 %v1865_v50 }
 0x2a4   :  { %867 = vmatpush.msra.mxu2 %v1868_v45  ;;  %887 = vmatpush.msra.mxu3 %v1871_v52 }
 0x2a5   :  { %828 = vmatpush.msra.mxu0 %v1874_v55  ;;  %848 = vmatpush.msra.mxu1 %v1877_v58 }
 0x2a6   :  { %868 = vmatpush.msra.mxu2 %v1880_v49  ;;  %888 = vmatpush.msra.mxu3 %v1883_v48 }
 0x2a7   :  { %829 = vmatpush.msra.mxu0 %v1886_v0  ;;  %849 = vmatpush.msra.mxu1 %v1889_v51 }
 0x2a8   :  { %869 = vmatpush.msra.mxu2 %v1892_v62  ;;  %889 = vmatpush.msra.mxu3 %v1895_v57 }
 0x2a9   :  { %830 = vmatpush.msra.mxu0 %v1898_v60  ;;  %850 = vmatpush.msra.mxu1 %v1901_v63 }
 0x2aa   :  { %870 = vmatpush.msra.mxu2 %v1904_v56  ;;  %890 = vmatpush.msra.mxu3 %v1907_v43 }
 0x2ab   :  { %831 = vmatpush.msra.mxu0 %v1910_v61  ;;  %851 = vmatpush.msra.mxu1 %v2423_v54 }
 0x2ac   :  { %871 = vmatpush.msra.mxu2 %v2424_v13  ;;  %891 = vmatpush.msra.mxu3 %v2425_v14 }
 0x2ad   :  { %832 = vmatpush.msra.mxu0 %v2426_v15  ;;  %852 = vmatpush.msra.mxu1 %v2427_v16 }
 0x2ae   :  { %872 = vmatpush.msra.mxu2 %v2428_v17  ;;  %892 = vmatpush.msra.mxu3 %v2429_v18 }
 0x2af   :  { %833 = vmatpush.msra.mxu0 %v2430_v19  ;;  %853 = vmatpush.msra.mxu1 %v2431_v20 }
 0x2b0   :  { %873 = vmatpush.msra.mxu2 %v1940_v26  ;;  %893 = vmatpush.msra.mxu3 %v1943_v28 }
 0x2b1   :  { %834 = vmatpush.msra.mxu0 %v1946_v29  ;;  %854 = vmatpush.msra.mxu1 %v1949_v59 }
 0x2b2   :  { %874 = vmatpush.msra.mxu2 %v1952_v53  ;;  %894 = vmatpush.msra.mxu3 %v1955_v24 }
 0x2b3   :  { %835 = vmatpush.msra.mxu0 %v2040_v21  ;;  %855 = vmatpush.msra.mxu1 %v2043_v22 }
 0x2b4   :  { %875 = vmatpush.msra.mxu2 %v2046_v23  ;;  %895 = vmatpush.msra.mxu3 %v2049_v41 }
 0x2b5   :  { %836 = vmatpush.msra.mxu0 %v2052_v1  ;;  %856 = vmatpush.msra.mxu1 %v2055_v2 }
 0x2b6   :  { %876 = vmatpush.msra.mxu2 %v2058_v3  ;;  %896 = vmatpush.msra.mxu3 %v2061_v4 }
 0x2b7   :  { %837 = vmatpush.msra.mxu0 %v2064_v5  ;;  %857 = vmatpush.msra.mxu1 %v2067_v6  ;;  %v2085_v6 = vld [vmem:[#allocation4 + $0x58] sm:$0xff] }
 0x2b8   :  { %877 = vmatpush.msra.mxu2 %v2070_v7  ;;  %897 = vmatpush.msra.mxu3 %v2073_v9  ;;  %2447 = vst [vmem:[#allocation37_spill] sm:$0xff] %v2085_v6  ;;  %v2088_v7 = vld [vmem:[#allocation4 + $0x20] sm:$0xff]  ;;  %v2091_v9 = vld [vmem:[#allocation4 + $0x28] sm:$0xff] }
 0x2b9   :  { %838 = vmatpush.msra.mxu0 %v2076_v10  ;;  %858 = vmatpush.msra.mxu1 %v2079_v11  ;;  %2448 = vst [vmem:[#allocation35_spill] sm:$0xff] %v2088_v7  ;;  %v2094_v10 = vld [vmem:[#allocation4 + $0x30] sm:$0xff]  ;;  %v2097_v11 = vld [vmem:[#allocation4 + $0x38] sm:$0xff] }
 0x2ba   :  { %878 = vmatpush.msra.mxu2 %v2082_v12  ;;  %898 = vmatpush.msra.mxu3 %v2085_v6  ;;  %2449 = vst [vmem:[#allocation10_spill] sm:$0xff] %v2091_v9  ;;  %v2100_v12 = vld [vmem:[#allocation4] sm:$0xff]  ;;  %v2103_v6 = vld [vmem:[#allocation4 + $0x8] sm:$0xff] }
 0x2bb   :  { %839 = vmatpush.msra.mxu0 %v2088_v7  ;;  %859 = vmatpush.msra.mxu1 %v2091_v9  ;;  %2450 = vst [vmem:[#allocation11_spill] sm:$0xff] %v2094_v10  ;;  %v2106_v7 = vld [vmem:[#allocation4 + $0x10] sm:$0xff]  ;;  %v2109_v9 = vld [vmem:[#allocation4 + $0x18] sm:$0xff] }
 0x2bc   :  { %879 = vmatpush.msra.mxu2 %v2094_v10  ;;  %2451 = vst [vmem:[#allocation12_spill] sm:$0xff] %v2097_v11  ;;  %899 = vmatpush.msra.mxu3 %v2097_v11  ;;  %v589_v10 = vpop.permute.xlu2 %588 }
 0x2bd   :  { %2452 = vst [vmem:[#allocation13_spill] sm:$0xff] %v2100_v12  ;;  %840 = vmatpush.msra.mxu0 %v2100_v12  ;;  %860 = vmatpush.msra.mxu1 %v2103_v6  ;;  %v591_v5 = vmul.f32 %v589_v10, %v2408_v25  ;;  %v592_v11 = vmul.f32 %v589_v10, %v2409_v27 }
 0x2be   :  { %2453 = vst [vmem:[#allocation14_spill] sm:$0xff] %v2103_v6  ;;  %880 = vmatpush.msra.mxu2 %v2106_v7  ;;  %900 = vmatpush.msra.mxu3 %v2109_v9  ;;  %v594_v22 = vmul.f32 %v589_v10, %v2412_v40 }
 0x2bf   :  { %2454 = vst [vmem:[#allocation15_spill] sm:$0xff] %v2106_v7  ;;  %v593_v7 = vmul.f32 %v589_v10, %v2411_v38 }
 0x2c0   :  { %2455 = vst [vmem:[#allocation16_spill] sm:$0xff] %v2109_v9 }
 0x31a   :  { %v612_v4 = vpop.f32.mrf.mxu0  ;;  %v632_v3 = vpop.f32.mrf.mxu1 }
 0x31b   :  { %v613_v12 = vadd.f32 %v612_v4, %v591_v5  ;;  %v633_v2 = vadd.f32 %v632_v3, %v592_v11 }
 0x31d   :  { %v675_v1 = vadd.f32 %v613_v12, %v2382_v47  ;;  %v676_v6 = vadd.f32 %v633_v2, %v2410_v34 }
 0x31f   :  { %v679_v41 = vmul.f32 0.5, %v675_v1  ;;  %v683_v23 = vmul.f32 0.5, %v676_v6 }
 0x321   :  { %1123 = vtanh.f32 %v679_v41  ;;  %v652_v9 = vpop.f32.mrf.mxu2  ;;  %v672_v21 = vpop.f32.mrf.mxu3 }
 0x322   :  { %1125 = vtanh.f32 %v683_v23  ;;  %v653_v25 = vadd.f32 %v652_v9, %v593_v7  ;;  %v673_v27 = vadd.f32 %v672_v21, %v594_v22 }
 0x324   :  { %v677_v24 = vadd.f32 %v653_v25, %v1666_v46  ;;  %v678_v3 = vadd.f32 %v673_v27, %v1669_v44 }
 0x326   :  { %1127 = vtanh.f32 %v677_v24  ;;  %v688_v4 = vmul.f32 0.5, %v678_v3 }
 0x327   :  { %v1124_v5 = vpop.eup %1123 }
 0x328   :  { %v1126_v2 = vpop.eup %1125  ;;  %v681_v1 = vadd.f32 1.0, %v1124_v5  ;;  %1129 = vtanh.f32 %v688_v4 }
 0x329   :  { %v685_v6 = vadd.f32 1.0, %v1126_v2 }
 0x32a   :  { %v682_v11 = vmul.f32 0.5, %v681_v1 }
 0x32b   :  { %v686_v12 = vmul.f32 0.5, %v685_v6 }
 0x32c   :  { %v1128_v10 = vpop.eup %1127 }
 0x32d   :  { %v692_v41 = vmul.f32 %v686_v12, %v1997_v8  ;;  %v693_v40 = vmul.f32 %v1128_v10, %v682_v11 }
 0x32e   :  { %v1130_v23 = vpop.eup %1129 }
 0x32f   :  { %v2121_v7 = vadd.f32 %v693_v40, %v692_v41  ;;  %v690_v25 = vadd.f32 1.0, %v1130_v23  ;;  %v2456_v40 = vld [vmem:[#allocation18_spill] sm:$0xff] }
 0x331   :  { %1131 = vtanh.f32 %v2121_v7  ;;  %v691_v27 = vmul.f32 0.5, %v690_v25 }
 0x337   :  { %v1132_v24 = vpop.eup %1131 }
 0x338   :  { %v696_v21 = vmul.f32 %v1132_v24, %v691_v27 }
 0x33a   :  { %698 = vst [vmem:[#allocation7 + $0x20] sm:$0xff] %v696_v21  ;;  %726 = vmatmul.f32.vlgmr.msrb.gmra.mxu0 %v696_v21  ;;  %746 = vmatmul.f32.vlgmr.msrb.gmra.mxu1 %v696_v21 }
 0x33b   :  { %766 = vmatmul.f32.vlgmr.msrb.gmra.mxu2 %v696_v21  ;;  %786 = vmatmul.f32.vlgmr.msrb.gmra.mxu3 %v696_v21 }
 0x33c   :  { %940 = vmatpush.msrb.mxu0 %v1838_v30  ;;  %960 = vmatpush.msrb.mxu1 %v1841_v42  ;;  %v2457_v30 = vld [vmem:[#allocation19_spill] sm:$0xff]  ;;  %v2458_v42 = vld [vmem:[#allocation20_spill] sm:$0xff] }
 0x33d   :  { %980 = vmatpush.msrb.mxu2 %v1844_v31  ;;  %1000 = vmatpush.msrb.mxu3 %v1847_v32  ;;  %v2459_v31 = vld [vmem:[#allocation21_spill] sm:$0xff]  ;;  %v2460_v32 = vld [vmem:[#allocation22_spill] sm:$0xff] }
 0x33e   :  { %941 = vmatpush.msrb.mxu0 %v1850_v33  ;;  %961 = vmatpush.msrb.mxu1 %v1853_v35  ;;  %v2461_v33 = vld [vmem:[#allocation23_spill] sm:$0xff]  ;;  %v2462_v35 = vld [vmem:[#allocation24_spill] sm:$0xff] }
 0x33f   :  { %981 = vmatpush.msrb.mxu2 %v1856_v36  ;;  %1001 = vmatpush.msrb.mxu3 %v1859_v37  ;;  %v2463_v36 = vld [vmem:[#allocation25_spill] sm:$0xff]  ;;  %v2464_v37 = vld [vmem:[#allocation26_spill] sm:$0xff] }
 0x340   :  { %942 = vmatpush.msrb.mxu0 %v1862_v39  ;;  %962 = vmatpush.msrb.mxu1 %v1865_v50  ;;  %v2465_v39 = vld [vmem:[#allocation27_spill] sm:$0xff]  ;;  %v2466_v50 = vld [vmem:[#allocation28_spill] sm:$0xff] }
 0x341   :  { %982 = vmatpush.msrb.mxu2 %v1868_v45  ;;  %1002 = vmatpush.msrb.mxu3 %v1871_v52  ;;  %v2467_v45 = vld [vmem:[#allocation29_spill] sm:$0xff]  ;;  %v2468_v52 = vld [vmem:[#allocation30_spill] sm:$0xff] }
 0x342   :  { %943 = vmatpush.msrb.mxu0 %v1874_v55  ;;  %963 = vmatpush.msrb.mxu1 %v1877_v58  ;;  %v2469_v55 = vld [vmem:[#allocation31_spill] sm:$0xff]  ;;  %v2470_v58 = vld [vmem:[#allocation32_spill] sm:$0xff] }
 0x343   :  { %983 = vmatpush.msrb.mxu2 %v1880_v49  ;;  %1003 = vmatpush.msrb.mxu3 %v1883_v48  ;;  %v2471_v49 = vld [vmem:[#allocation36_spill] sm:$0xff]  ;;  %v2472_v48 = vld [vmem:[#allocation37_spill] sm:$0xff] }
 0x344   :  { %944 = vmatpush.msrb.mxu0 %v1886_v0  ;;  %964 = vmatpush.msrb.mxu1 %v1889_v51  ;;  %v2473_v0 = vld [vmem:[#allocation35_spill] sm:$0xff]  ;;  %v2474_v51 = vld [vmem:[#allocation10_spill] sm:$0xff] }
 0x345   :  { %984 = vmatpush.msrb.mxu2 %v1892_v62  ;;  %1004 = vmatpush.msrb.mxu3 %v1895_v57  ;;  %v2475_v62 = vld [vmem:[#allocation11_spill] sm:$0xff]  ;;  %v2476_v57 = vld [vmem:[#allocation12_spill] sm:$0xff] }
 0x346   :  { %945 = vmatpush.msrb.mxu0 %v1898_v60  ;;  %965 = vmatpush.msrb.mxu1 %v1901_v63  ;;  %v2477_v60 = vld [vmem:[#allocation13_spill] sm:$0xff]  ;;  %v2478_v63 = vld [vmem:[#allocation14_spill] sm:$0xff] }
 0x347   :  { %985 = vmatpush.msrb.mxu2 %v1904_v56  ;;  %1005 = vmatpush.msrb.mxu3 %v1907_v43  ;;  %v2479_v56 = vld [vmem:[#allocation15_spill] sm:$0xff]  ;;  %v2480_v43 = vld [vmem:[#allocation16_spill] sm:$0xff] }
 0x348   :  { %946 = vmatpush.msrb.mxu0 %v1910_v61  ;;  %966 = vmatpush.msrb.mxu1 %v2423_v54  ;;  %v704_v61 = vpop.permute.xlu2 %703 }
 0x349   :  { %986 = vmatpush.msrb.mxu2 %v2424_v13  ;;  %1006 = vmatpush.msrb.mxu3 %v2425_v14 }
 0x34a   :  { %947 = vmatpush.msrb.mxu0 %v2426_v15  ;;  %967 = vmatpush.msrb.mxu1 %v2427_v16 }
 0x34b   :  { %987 = vmatpush.msrb.mxu2 %v2428_v17  ;;  %1007 = vmatpush.msrb.mxu3 %v2429_v18  ;;  %v708_v18 = vmul.f32 %v704_v61, %v2411_v38 }
 0x34c   :  { %948 = vmatpush.msrb.mxu0 %v2430_v19  ;;  %968 = vmatpush.msrb.mxu1 %v2431_v20  ;;  %v2483_v19 = vld [vmem:[#allocation38_spill] sm:$0xff] }
 0x34d   :  { %988 = vmatpush.msrb.mxu2 %v1940_v26  ;;  %1008 = vmatpush.msrb.mxu3 %v1943_v28  ;;  %v2482_v26 = vld [vmem:[#allocation34_spill] sm:$0xff]  ;;  %v709_v20 = vmul.f32 %v704_v61, %v2483_v19 }
 0x34e   :  { %949 = vmatpush.msrb.mxu0 %v1946_v29  ;;  %969 = vmatpush.msrb.mxu1 %v1949_v59  ;;  %v2481_v59 = vld [vmem:[#allocation33_spill] sm:$0xff]  ;;  %v707_v28 = vmul.f32 %v704_v61, %v2482_v26 }
 0x34f   :  { %989 = vmatpush.msrb.mxu2 %v1952_v53  ;;  %1009 = vmatpush.msrb.mxu3 %v2456_v40  ;;  %v706_v53 = vmul.f32 %v704_v61, %v2481_v59 }
 0x350   :  { %950 = vmatpush.msrb.mxu0 %v2457_v30  ;;  %970 = vmatpush.msrb.mxu1 %v2458_v42 }
 0x351   :  { %990 = vmatpush.msrb.mxu2 %v2459_v31  ;;  %1010 = vmatpush.msrb.mxu3 %v2460_v32 }
 0x352   :  { %951 = vmatpush.msrb.mxu0 %v2461_v33  ;;  %971 = vmatpush.msrb.mxu1 %v2462_v35  ;;  %v819_v33 = vpop.permute.xlu0 %818 }
 0x353   :  { %991 = vmatpush.msrb.mxu2 %v2463_v36  ;;  %1011 = vmatpush.msrb.mxu3 %v2464_v37  ;;  %v821_v35 = vmul.f32 %v819_v33, %v2481_v59  ;;  %v822_v36 = vmul.f32 %v819_v33, %v2482_v26 }
 0x354   :  { %952 = vmatpush.msrb.mxu0 %v2465_v39  ;;  %972 = vmatpush.msrb.mxu1 %v2466_v50 }
 0x355   :  { %992 = vmatpush.msrb.mxu2 %v2467_v45  ;;  %1012 = vmatpush.msrb.mxu3 %v2468_v52 }
 0x356   :  { %953 = vmatpush.msrb.mxu0 %v2469_v55  ;;  %973 = vmatpush.msrb.mxu1 %v2470_v58 }
 0x357   :  { %993 = vmatpush.msrb.mxu2 %v2471_v49  ;;  %1013 = vmatpush.msrb.mxu3 %v2472_v48  ;;  %v823_v49 = vmul.f32 %v819_v33, %v2411_v38  ;;  %v824_v48 = vmul.f32 %v819_v33, %v2483_v19 }
 0x358   :  { %954 = vmatpush.msrb.mxu0 %v2473_v0  ;;  %974 = vmatpush.msrb.mxu1 %v2474_v51 }
 0x359   :  { %994 = vmatpush.msrb.mxu2 %v2475_v62  ;;  %1014 = vmatpush.msrb.mxu3 %v2476_v57 }
 0x35a   :  { %955 = vmatpush.msrb.mxu0 %v2477_v60  ;;  %975 = vmatpush.msrb.mxu1 %v2478_v63 }
 0x35b   :  { %995 = vmatpush.msrb.mxu2 %v2479_v56  ;;  %1015 = vmatpush.msrb.mxu3 %v2480_v43 }
 0x3b7   :  { %v727_v29 = vpop.f32.mrf.mxu0  ;;  %v747_v8 = vpop.f32.mrf.mxu1 }
 0x3b8   :  { %v728_v54 = vadd.f32 %v727_v29, %v706_v53  ;;  %v748_v13 = vadd.f32 %v747_v8, %v707_v28 }
 0x3ba   :  { %v790_v14 = vadd.f32 %v728_v54, %v2382_v47  ;;  %v791_v15 = vadd.f32 %v748_v13, %v2410_v34 }
 0x3bc   :  { %v794_v16 = vmul.f32 0.5, %v790_v14  ;;  %v798_v17 = vmul.f32 0.5, %v791_v15 }
 0x3be   :  { %1133 = vtanh.f32 %v794_v16  ;;  %v767_v22 = vpop.f32.mrf.mxu2  ;;  %v787_v9 = vpop.f32.mrf.mxu3 }
 0x3bf   :  { %1135 = vtanh.f32 %v798_v17  ;;  %v768_v3 = vadd.f32 %v767_v22, %v708_v18  ;;  %v788_v4 = vadd.f32 %v787_v9, %v709_v20  ;;  %v934_v9 = vpop.permute.xlu1 %933 }
 0x3c1   :  { %v792_v5 = vadd.f32 %v768_v3, %v1666_v46  ;;  %v793_v2 = vadd.f32 %v788_v4, %v1669_v44  ;;  %v936_v3 = vmul.f32 %v934_v9, %v2481_v59  ;;  %v937_v4 = vmul.f32 %v934_v9, %v2482_v26 }
 0x3c3   :  { %1137 = vtanh.f32 %v792_v5  ;;  %v803_v1 = vmul.f32 0.5, %v793_v2 }
 0x3c4   :  { %v1134_v6 = vpop.eup %1133 }
 0x3c5   :  { %v1136_v11 = vpop.eup %1135  ;;  %v796_v12 = vadd.f32 1.0, %v1134_v6  ;;  %1139 = vtanh.f32 %v803_v1 }
 0x3c6   :  { %v800_v10 = vadd.f32 1.0, %v1136_v11 }
 0x3c7   :  { %v797_v41 = vmul.f32 0.5, %v796_v12 }
 0x3c8   :  { %v801_v23 = vmul.f32 0.5, %v800_v10 }
 0x3c9   :  { %v1138_v25 = vpop.eup %1137 }
 0x3ca   :  { %v807_v27 = vmul.f32 %v801_v23, %v2121_v7  ;;  %v808_v24 = vmul.f32 %v1138_v25, %v797_v41  ;;  %v938_v23 = vmul.f32 %v934_v9, %v2411_v38  ;;  %v939_v25 = vmul.f32 %v934_v9, %v2483_v19 }
 0x3cb   :  { %v1140_v21 = vpop.eup %1139 }
 0x3cc   :  { %v809_v40 = vadd.f32 %v808_v24, %v807_v27  ;;  %v805_v30 = vadd.f32 1.0, %v1140_v21 }
 0x3ce   :  { %1141 = vtanh.f32 %v809_v40  ;;  %v806_v42 = vmul.f32 0.5, %v805_v30 }
 0x3d4   :  { %v1142_v31 = vpop.eup %1141 }
 0x3d5   :  { %v811_v32 = vmul.f32 %v1142_v31, %v806_v42 }
 0x3d7   :  { %813 = vst [vmem:[#allocation7 + $0x28] sm:$0xff] %v811_v32  ;;  %841 = vmatmul.f32.vlgmr.msra.gmra.mxu0 %v811_v32  ;;  %861 = vmatmul.f32.vlgmr.msra.gmra.mxu1 %v811_v32 }
 0x3d8   :  { %881 = vmatmul.f32.vlgmr.msra.gmra.mxu2 %v811_v32  ;;  %901 = vmatmul.f32.vlgmr.msra.gmra.mxu3 %v811_v32 }
 0x454   :  { %v842_v37 = vpop.f32.mrf.mxu0  ;;  %v862_v7 = vpop.f32.mrf.mxu1 }
 0x455   :  { %v843_v39 = vadd.f32 %v842_v37, %v821_v35  ;;  %v863_v50 = vadd.f32 %v862_v7, %v822_v36 }
 0x457   :  { %v905_v45 = vadd.f32 %v843_v39, %v2382_v47  ;;  %v906_v52 = vadd.f32 %v863_v50, %v2410_v34 }
 0x459   :  { %v909_v55 = vmul.f32 0.5, %v905_v45  ;;  %v913_v58 = vmul.f32 0.5, %v906_v52 }
 0x45b   :  { %1143 = vtanh.f32 %v909_v55  ;;  %v882_v0 = vpop.f32.mrf.mxu2  ;;  %v902_v51 = vpop.f32.mrf.mxu3 }
 0x45c   :  { %1145 = vtanh.f32 %v913_v58  ;;  %v883_v62 = vadd.f32 %v882_v0, %v823_v49  ;;  %v903_v57 = vadd.f32 %v902_v51, %v824_v48 }
 0x45e   :  { %v907_v60 = vadd.f32 %v883_v62, %v1666_v46  ;;  %v908_v63 = vadd.f32 %v903_v57, %v1669_v44 }
 0x460   :  { %1147 = vtanh.f32 %v907_v60  ;;  %v918_v56 = vmul.f32 0.5, %v908_v63 }
 0x461   :  { %v1144_v43 = vpop.eup %1143 }
 0x462   :  { %v1146_v61 = vpop.eup %1145  ;;  %v911_v53 = vadd.f32 1.0, %v1144_v43  ;;  %1149 = vtanh.f32 %v918_v56 }
 0x463   :  { %v915_v28 = vadd.f32 1.0, %v1146_v61 }
 0x464   :  { %v912_v29 = vmul.f32 0.5, %v911_v53 }
 0x465   :  { %v916_v8 = vmul.f32 0.5, %v915_v28 }
 0x466   :  { %v1148_v54 = vpop.eup %1147 }
 0x467   :  { %v922_v13 = vmul.f32 %v916_v8, %v809_v40  ;;  %v923_v14 = vmul.f32 %v1148_v54, %v912_v29 }
 0x468   :  { %v1150_v15 = vpop.eup %1149 }
 0x469   :  { %v924_v16 = vadd.f32 %v923_v14, %v922_v13  ;;  %v920_v17 = vadd.f32 1.0, %v1150_v15 }
 0x46b   :  { %1151 = vtanh.f32 %v924_v16  ;;  %v921_v18 = vmul.f32 0.5, %v920_v17 }
 0x471   :  { %v1152_v20 = vpop.eup %1151 }
 0x472   :  { %v926_v22 = vmul.f32 %v1152_v20, %v921_v18 }
 0x474   :  { %928 = vst [vmem:[#allocation7 + $0x30] sm:$0xff] %v926_v22  ;;  %956 = vmatmul.f32.vlgmr.msrb.gmra.mxu0 %v926_v22  ;;  %976 = vmatmul.f32.vlgmr.msrb.gmra.mxu1 %v926_v22 }
 0x475   :  { %996 = vmatmul.f32.vlgmr.msrb.gmra.mxu2 %v926_v22  ;;  %1016 = vmatmul.f32.vlgmr.msrb.gmra.mxu3 %v926_v22 }
 0x4f1   :  { %v957_v5 = vpop.f32.mrf.mxu0  ;;  %v977_v2 = vpop.f32.mrf.mxu1 }
 0x4f2   :  { %v958_v1 = vadd.f32 %v957_v5, %v936_v3  ;;  %v978_v6 = vadd.f32 %v977_v2, %v937_v4 }
 0x4f4   :  { %v1020_v11 = vadd.f32 %v958_v1, %v2382_v47  ;;  %v1021_v12 = vadd.f32 %v978_v6, %v2410_v34 }
 0x4f6   :  { %v1024_v10 = vmul.f32 0.5, %v1020_v11  ;;  %v1028_v41 = vmul.f32 0.5, %v1021_v12 }
 0x4f8   :  { %1153 = vtanh.f32 %v1024_v10  ;;  %v997_v27 = vpop.f32.mrf.mxu2  ;;  %v1017_v24 = vpop.f32.mrf.mxu3 }
 0x4f9   :  { %1155 = vtanh.f32 %v1028_v41  ;;  %v998_v59 = vadd.f32 %v997_v27, %v938_v23  ;;  %v1018_v26 = vadd.f32 %v1017_v24, %v939_v25 }
 0x4fb   :  { %v1022_v21 = vadd.f32 %v998_v59, %v1666_v46  ;;  %v1023_v40 = vadd.f32 %v1018_v26, %v1669_v44 }
 0x4fd   :  { %1157 = vtanh.f32 %v1022_v21  ;;  %v1033_v47 = vmul.f32 0.5, %v1023_v40 }
 0x4fe   :  { %v1154_v30 = vpop.eup %1153 }
 0x4ff   :  { %v1156_v34 = vpop.eup %1155  ;;  %v1026_v42 = vadd.f32 1.0, %v1154_v30  ;;  %1159 = vtanh.f32 %v1033_v47 }
 0x500   :  { %v1030_v31 = vadd.f32 1.0, %v1156_v34 }
 0x501   :  { %v1027_v38 = vmul.f32 0.5, %v1026_v42 }
 0x502   :  { %v1031_v32 = vmul.f32 0.5, %v1030_v31 }
 0x503   :  { %v1158_v19 = vpop.eup %1157 }
 0x504   :  { %v1037_v33 = vmul.f32 %v1031_v32, %v924_v16  ;;  %v1038_v35 = vmul.f32 %v1158_v19, %v1027_v38 }
 0x505   :  { %v1160_v36 = vpop.eup %1159 }
 0x506   :  { %v1039_v37 = vadd.f32 %v1038_v35, %v1037_v33  ;;  %v1035_v7 = vadd.f32 1.0, %v1160_v36 }
 0x508   :  { %1161 = vtanh.f32 %v1039_v37  ;;  %v1036_v44 = vmul.f32 0.5, %v1035_v7 }
 0x50e   :  { %v1162_v46 = vpop.eup %1161 }
 0x50f   :  { %v1041_v39 = vmul.f32 %v1162_v46, %v1036_v44 }
 0x511   :  { %1043 = vst [vmem:[#allocation7 + $0x38] sm:$0xff] %v1041_v39 }
 0x512   :  { %1058 = dma.vmem_to_hbm [thread:$0]  %s1051_s13, 1024, %s1053_s16, [#allocation6], %s1285_s17, %s1285_s17, %s1286_s18  }
 0x513   :  { %1277 = dma.done.wait [#allocation6], 1024  }
 0x514   :  { %1278 = vsyncadd [#allocation6], 4294966272 }
 0x515   :  { %1063 = vsyncpa [#allocation5], 1 }
 0x516   :  { %1064 = vsyncpa [#allocation6], 1 }

</bundles_post_ra>
